<compile_context>
chip_gen: v5e
topology: v5e:2x2
jax: 0.10.0
libtpu: 0.0.40
codegen_flags: <defaults>
</compile_context>

<pallas_src>
import numpy as np
import jax
import jax.numpy as jnp
from jax.experimental import pallas as pl
from jax.experimental.pallas import tpu as pltpu

N_FREQ = 7                       # config.n_freq_pos
ENC_DIM = 2 * 3 * N_FREQ         # 42  (sin + cos, 3 dims, 7 freqs)
ENC_PAD = 2 * 3 * (N_FREQ + 1)   # 48  (freq axis padded to 8 for aligned sublane concats)
WIDTH = 128                      # config.mlp_layer_width
EPS = 1e-4                       # se3_exp_map eps
TN_MAX = 2048                    # points per grid step (sweep 2048-4096)

# Exact powers of two [1,2,...,64] + a zero dummy slot (matches zero-padded weight cols).
_FREQS8 = np.concatenate(
    [2.0 ** np.arange(N_FREQ, dtype=np.float64), np.zeros((1,), np.float64)]
).astype(np.float32)


def _se3_warp_kernel(p_ref, f_ref,
                     w0_ref, w1_ref, w2_ref, w3_ref, w4e_ref, w4h_ref,
                     w5_ref, wrv_ref, b_ref,
                     out_ref):
    p = p_ref[...].astype(jnp.float32)            # (3, TN) lane-dense positions
    px = p[0:1, :]
    py = p[1:2, :]
    pz = p[2:3, :]

    f8 = f_ref[...]                               # (8, 1) == 2*pi*[1,2,...,64,0]

    # MultiScaleSinousidalEncoding in transposed layout: enc row = block(sin/cos)*24
    # + dim*8 + freq, matching the padded weight column order of _expand_enc_weight.
    sx = f8 * px                                  # (8, TN)
    sy = f8 * py
    sz = f8 * pz
    scaled = jnp.concatenate([sx, sy, sz], axis=0)                       # (24, TN)
    enc = jnp.concatenate([jnp.sin(scaled), jnp.cos(scaled)], axis=0)    # (48, TN) f32
    enc_b = enc.astype(jnp.bfloat16)              # bf16 operand for the MXU

    relu = lambda a: jnp.maximum(a, 0.0)
    bf16 = lambda a: a.astype(jnp.bfloat16)

    def lin(w_ref, x_b16, bcol):
        # bf16 x bf16 matmul with f32 accumulation; bias/ReLU stay f32 on the VPU.
        return jnp.dot(w_ref[...], x_b16, preferred_element_type=jnp.float32) + bcol

    # mlp_stem: 6 layers, skip (cat[enc, h]) before layer 4, out_activation ReLU.
    h = bf16(relu(lin(w0_ref, enc_b, b_ref[:, 0:1])))                    # (128, TN)
    h = bf16(relu(lin(w1_ref, h, b_ref[:, 1:2])))
    h = bf16(relu(lin(w2_ref, h, b_ref[:, 2:3])))
    h = bf16(relu(lin(w3_ref, h, b_ref[:, 3:4])))
    # skip layer as two chained dots (v7x MRB can accumulate the second in place).
    h4 = (jnp.dot(w4e_ref[...], enc_b, preferred_element_type=jnp.float32)
          + jnp.dot(w4h_ref[...], h, preferred_element_type=jnp.float32)
          + b_ref[:, 4:5])
    h = bf16(relu(h4))
    feat = bf16(relu(lin(w5_ref, h, b_ref[:, 5:6])))                     # (128, TN)

    # fused r/v heads: rows 0..2 = log_rotation, rows 3..5 = log_translation
    rv = (jnp.dot(wrv_ref[...], feat, preferred_element_type=jnp.float32)
          + b_ref[0:8, 6:7])                                             # (8, TN) f32
    rx = rv[0:1, :]; ry = rv[1:2, :]; rz = rv[2:3, :]
    vx = rv[3:4, :]; vy = rv[4:5, :]; vz = rv[5:6, :]

    # NOTE(perf): the per-component rows below are (1, TN) -> 1/8 sublane density.
    # A fully dense variant (reshape each row to (8, TN//8) before the vector math)
    # would cut this section's VALU work ~8x, but that relayout is the only construct
    # here without a guaranteed-cheap Mosaic lowering, so it is deferred; at TN=2048 the
    # section costs ~0.2 VPU-cycles/point vs ~0.8 MXU-cycles/point for the bf16 MLP,
    # so the MXU remains the binding unit.
    #
    # se3_exp_map, elementwise form on (1, TN) lane-dense rows:
    #   hat(r) @ u == r x u ;  hat(r)^2 @ u == r (r.u) - u ||r||^2
    nrms = rx * rx + ry * ry + rz * rz
    theta = jnp.sqrt(jnp.maximum(nrms, EPS))
    # approx reciprocal (~2^-12 rel. error) runs on the EUP slot; flip to approx=False
    # if bit-tight agreement with the torch reference is required with trained weights.
    inv_t = pl.reciprocal(theta, approx=True)
    sin_t = jnp.sin(theta)
    cos_t = jnp.cos(theta)
    fac1 = inv_t * sin_t                                 # sin(t)/t
    fac2 = inv_t * inv_t * (1.0 - cos_t)                 # (1-cos t)/t^2
    fac3 = inv_t * inv_t * inv_t * (theta - sin_t)       # (t - sin t)/t^3

    # R @ p  with  R = I + fac1*hat(r) + fac2*hat(r)^2
    cpx = ry * pz - rz * py
    cpy = rz * px - rx * pz
    cpz = rx * py - ry * px
    rdotp = rx * px + ry * py + rz * pz
    rpx = px + fac1 * cpx + fac2 * (rx * rdotp - px * nrms)
    rpy = py + fac1 * cpy + fac2 * (ry * rdotp - py * nrms)
    rpz = pz + fac1 * cpz + fac2 * (rz * rdotp - pz * nrms)

    # T = V @ v  with  V = I + fac2*hat(r) + fac3*hat(r)^2
    cvx = ry * vz - rz * vy
    cvy = rz * vx - rx * vz
    cvz = rx * vy - ry * vx
    rdotv = rx * vx + ry * vy + rz * vz
    tx = vx + fac2 * cvx + fac3 * (rx * rdotv - vx * nrms)
    ty = vy + fac2 * cvy + fac3 * (ry * rdotv - vy * nrms)
    tz = vz + fac2 * cvz + fac3 * (rz * rdotv - vz * nrms)

    # apply_transform: [R p + T; 1], from_homogenous divides by w == 1 exactly.
    wx = rpx + tx
    wy = rpy + ty
    wz = rpz + tz
    out_ref[0:1, :] = jnp.where(jnp.isnan(wx), px, wx).astype(out_ref.dtype)
    out_ref[1:2, :] = jnp.where(jnp.isnan(wy), py, wy).astype(out_ref.dtype)
    out_ref[2:3, :] = jnp.where(jnp.isnan(wz), pz, wz).astype(out_ref.dtype)


def init_params(key):
    """Deterministic synthetic parameters, torch (out_features, in_features) layout."""
    def linear(k, fan_in, fan_out):
        k1, k2 = jax.random.split(k)
        bound = 1.0 / np.sqrt(fan_in)
        w = jax.random.uniform(k1, (fan_out, fan_in), jnp.float32, -bound, bound)
        b = jax.random.uniform(k2, (fan_out,), jnp.float32, -bound, bound)
        return w, b

    ks = jax.random.split(key, 8)
    w0, b0 = linear(ks[0], ENC_DIM, WIDTH)
    w1, b1 = linear(ks[1], WIDTH, WIDTH)
    w2, b2 = linear(ks[2], WIDTH, WIDTH)
    w3, b3 = linear(ks[3], WIDTH, WIDTH)
    w4, b4 = linear(ks[4], ENC_DIM + WIDTH, WIDTH)   # skip layer: cat([enc, h3])
    w5, b5 = linear(ks[5], WIDTH, WIDTH)
    wr = jax.random.uniform(ks[6], (3, WIDTH), jnp.float32, -1e-5, 1e-5)
    br = jnp.zeros((3,), jnp.float32)
    wv = jax.random.uniform(ks[7], (3, WIDTH), jnp.float32, -1e-5, 1e-5)
    bv = jnp.zeros((3,), jnp.float32)
    return (w0, b0, w1, b1, w2, b2, w3, b3, w4, b4, w5, b5, wr, br, wv, bv)


def _expand_enc_weight(w):
    """(out, 42) encoding weight -> (out, 48): pad the freq axis 7 -> 8 with zeros.

    Original column order is block(sin/cos)*21 + dim*7 + freq; padded order is
    block*24 + dim*8 + freq -- matching the kernel's (48, TN) encoding rows."""
    out_dim = w.shape[0]
    w = w.reshape(out_dim, 2, 3, N_FREQ)
    w = jnp.pad(w, ((0, 0), (0, 0), (0, 0), (0, 1)))
    return w.reshape(out_dim, ENC_PAD)


def _pack_params(params):
    """Torch-layout params -> kernel params: padded enc weights, fused heads, bf16 MXU
    weights, one packed (128, 8) f32 bias operand, and the (8,1) frequency column."""
    (w0, b0, w1, b1, w2, b2, w3, b3, w4, b4, w5, b5, wr, br, wv, bv) = params
    w4e = w4[:, :ENC_DIM]
    w4h = w4[:, ENC_DIM:]
    wrv = jnp.concatenate([wr, wv, jnp.zeros((2, WIDTH), jnp.float32)], axis=0)  # (8,128)
    brv = jnp.concatenate([br, bv, jnp.zeros((2,), jnp.float32)])                # (8,)
    brv_col = jnp.concatenate([brv, jnp.zeros((WIDTH - 8,), jnp.float32)])       # (128,)
    bias_pack = jnp.stack(
        [b0, b1, b2, b3, b4, b5, brv_col, jnp.zeros((WIDTH,), jnp.float32)],
        axis=1)                                                                  # (128,8)
    fcol = jnp.asarray((2.0 * np.pi) * _FREQS8, jnp.float32)[:, None]            # (8,1)

    bf = lambda w: w.astype(jnp.bfloat16)
    return (fcol,
            bf(_expand_enc_weight(w0)), bf(w1), bf(w2), bf(w3),
            bf(_expand_enc_weight(w4e)), bf(w4h), bf(w5), bf(wrv),
            bias_pack)


def se3_warping_field(positions, params, tn_max=TN_MAX):
    """Pallas implementation of SE3WarpingField.forward(positions) (no warp_code/window).

    NOTE(perf): for multi-million-point batches, callers that can pass / consume the
    (3, N) layout directly avoid the wrapper-side transposes below (they are pure HBM
    traffic; the kernel itself is compute-bound)."""
    orig_shape = positions.shape
    p = positions.reshape(-1, 3).astype(jnp.float32)
    n = p.shape[0]

    n128 = pl.cdiv(n, 128) * 128
    tn = min(tn_max, n128)
    steps = pl.cdiv(n128, tn)
    if steps == 1 and n128 >= 256:
        steps = 2            # allow the 'parallel' axis to split across v7x's 2 TCs
    if steps > 1 and steps % 2 == 1:
        steps += 1           # even step count -> balanced megacore sharding
    tn = pl.cdiv(pl.cdiv(n128, steps), 128) * 128
    n_pad = steps * tn

    p_t = jnp.pad(p.T, ((0, 0), (0, n_pad - n)))      # (3, n_pad), lane-dense

    kparams = _pack_params(params)
    # Grid-invariant weights: on VMEM-tight v7x configs these could be single-buffered
    # with pl.BlockSpec(w.shape, lambda i: (0, 0), pipeline_mode=pl.Buffered(1)); kept at
    # the default here (~0.4 MB of double-buffered weights) for maximum lowering safety.
    weight_specs = [pl.BlockSpec(w.shape, lambda i: (0, 0)) for w in kparams]

    out = pl.pallas_call(
        _se3_warp_kernel,
        out_shape=jax.ShapeDtypeStruct((3, n_pad), jnp.float32),
        grid_spec=pltpu.PrefetchScalarGridSpec(
            num_scalar_prefetch=0,
            grid=(steps,),
            in_specs=[pl.BlockSpec((3, tn), lambda i: (0, i))] + weight_specs,
            out_specs=pl.BlockSpec((3, tn), lambda i: (0, i)),
        ),
        compiler_params=pltpu.CompilerParams(
            dimension_semantics=("parallel",),
            # v5e's default scoped VMEM is 16 MiB; raise explicitly (and further if
            # sweeping tn_max to 4096).
            vmem_limit_bytes=32 * 1024 * 1024,
        ),
    )(p_t, *kparams)

    return out[:, :n].T.reshape(orig_shape)


def reference(positions, params):
    """Pure-JAX f32 reference (mirrors the torch code structurally) for validation."""
    (w0, b0, w1, b1, w2, b2, w3, b3, w4, b4, w5, b5, wr, br, wv, bv) = params
    p = positions.reshape(-1, 3).astype(jnp.float32)
    x = 2.0 * jnp.pi * p
    freqs = jnp.asarray(_FREQS8[:N_FREQ])
    scaled = (x[..., None] * freqs).reshape(p.shape[0], -1)
    enc = jnp.sin(jnp.concatenate([scaled, scaled + jnp.pi / 2.0], axis=-1))

    relu = lambda a: jnp.maximum(a, 0.0)
    h = relu(enc @ w0.T + b0)
    h = relu(h @ w1.T + b1)
    h = relu(h @ w2.T + b2)
    h3 = relu(h @ w3.T + b3)
    h = relu(jnp.concatenate([enc, h3], -1) @ w4.T + b4)
    feat = relu(h @ w5.T + b5)
    r = feat @ wr.T + br          # log_rotation
    v = feat @ wv.T + bv          # log_translation

    def hat(u):
        ux, uy, uz = u[:, 0], u[:, 1], u[:, 2]
        z = jnp.zeros_like(ux)
        return jnp.stack([jnp.stack([z, -uz, uy], -1),
                          jnp.stack([uz, z, -ux], -1),
                          jnp.stack([-uy, ux, z], -1)], -2)

    nrms = jnp.sum(r * r, axis=1)
    theta = jnp.sqrt(jnp.maximum(nrms, EPS))
    fac1 = jnp.sin(theta) / theta
    fac2 = (1.0 - jnp.cos(theta)) / theta ** 2
    fac3 = (theta - jnp.sin(theta)) / theta ** 3
    skews = hat(r)
    skews_sq = jnp.matmul(skews, skews)
    I3 = jnp.eye(3, dtype=jnp.float32)
    R = fac1[:, None, None] * skews + fac2[:, None, None] * skews_sq + I3[None]
    V = I3[None] + skews * fac2[:, None, None] + skews_sq * fac3[:, None, None]
    T = jnp.matmul(V, v[:, :, None])[:, :, 0]
    warped = jnp.matmul(R, p[:, :, None])[:, :, 0] + T
    warped = jnp.where(jnp.isnan(warped), p, warped)
    return warped.reshape(positions.shape)


if __name__ == "__main__":
    key = jax.random.PRNGKey(0)
    kp, kx = jax.random.split(key)
    params = init_params(kp)

    # small example: (batch=2, points=100, 3) -> exercises padding + a 2-step grid
    positions = jax.random.uniform(kx, (2, 100, 3), jnp.float32, -1.0, 1.0)

    out = jax.block_until_ready(se3_warping_field(positions, params))

    with jax.default_matmul_precision("float32"):
        ref = jax.block_until_ready(reference(positions, params))

    assert out.shape == positions.shape
    assert bool(jnp.all(jnp.isfinite(out)))
    # Tolerance accounts for the bf16 MXU path and the approx reciprocal: with the
    # module's near-zero r/v head init the warp correction is ~1e-4, so the absolute
    # error on warped positions stays ~1e-5; 2e-4 leaves >10x margin.
    np.testing.assert_allclose(np.asarray(out), np.asarray(ref),
                               atol=2e-4, rtol=2e-4)
    print("KERNEL_OK")
</pallas_src>

<mosaic_0001>
module attributes {stable_mosaic.version = 11 : i64} {
  func.func @_se3_warp_kernel(%arg0: i32, %arg1: memref<3x128xf32, #tpu.memory_space<vmem>>, %arg2: memref<8x1xf32, #tpu.memory_space<vmem>>, %arg3: memref<128x48xbf16, #tpu.memory_space<vmem>>, %arg4: memref<128x128xbf16, #tpu.memory_space<vmem>>, %arg5: memref<128x128xbf16, #tpu.memory_space<vmem>>, %arg6: memref<128x128xbf16, #tpu.memory_space<vmem>>, %arg7: memref<128x48xbf16, #tpu.memory_space<vmem>>, %arg8: memref<128x128xbf16, #tpu.memory_space<vmem>>, %arg9: memref<128x128xbf16, #tpu.memory_space<vmem>>, %arg10: memref<8x128xbf16, #tpu.memory_space<vmem>>, %arg11: memref<128x8xf32, #tpu.memory_space<vmem>>, %arg12: memref<3x128xf32, #tpu.memory_space<vmem>>) attributes {dimension_semantics = [#tpu.dimension_semantics<parallel>], iteration_bounds = array<i64: 2>, scalar_prefetch = 0 : i64, scratch_operands = 0 : i64, tpu.core_type = #tpu.core_type<tc>, window_params = [{transform_indices = @transform_0, window_bounds = array<i64: 3, 128>}, {pipeline_mode = #tpu.pipeline_mode<synchronous>, transform_indices = @transform_1, window_bounds = array<i64: 8, 1>}, {pipeline_mode = #tpu.pipeline_mode<synchronous>, transform_indices = @transform_2, window_bounds = array<i64: 128, 48>}, {pipeline_mode = #tpu.pipeline_mode<synchronous>, transform_indices = @transform_3, window_bounds = array<i64: 128, 128>}, {pipeline_mode = #tpu.pipeline_mode<synchronous>, transform_indices = @transform_4, window_bounds = array<i64: 128, 128>}, {pipeline_mode = #tpu.pipeline_mode<synchronous>, transform_indices = @transform_5, window_bounds = array<i64: 128, 128>}, {pipeline_mode = #tpu.pipeline_mode<synchronous>, transform_indices = @transform_6, window_bounds = array<i64: 128, 48>}, {pipeline_mode = #tpu.pipeline_mode<synchronous>, transform_indices = @transform_7, window_bounds = array<i64: 128, 128>}, {pipeline_mode = #tpu.pipeline_mode<synchronous>, transform_indices = @transform_8, window_bounds = array<i64: 128, 128>}, {pipeline_mode = #tpu.pipeline_mode<synchronous>, transform_indices = @transform_9, window_bounds = array<i64: 8, 128>}, {pipeline_mode = #tpu.pipeline_mode<synchronous>, transform_indices = @transform_10, window_bounds = array<i64: 128, 8>}, {transform_indices = @transform_11, window_bounds = array<i64: 3, 128>}]} {
    %c0 = arith.constant 0 : index
    %c0_0 = arith.constant 0 : index
    %0 = vector.load %arg1[%c0, %c0_0] : memref<3x128xf32, #tpu.memory_space<vmem>>, vector<3x128xf32>
    %1 = vector.extract_strided_slice %0 {offsets = [0, 0], sizes = [1, 128], strides = [1, 1]} : vector<3x128xf32> to vector<1x128xf32>
    %2 = vector.extract_strided_slice %0 {offsets = [1, 0], sizes = [1, 128], strides = [1, 1]} : vector<3x128xf32> to vector<1x128xf32>
    %3 = vector.extract_strided_slice %0 {offsets = [2, 0], sizes = [1, 128], strides = [1, 1]} : vector<3x128xf32> to vector<1x128xf32>
    %c0_1 = arith.constant 0 : index
    %c0_2 = arith.constant 0 : index
    %4 = vector.load %arg2[%c0_1, %c0_2] : memref<8x1xf32, #tpu.memory_space<vmem>>, vector<8x1xf32>
    %5 = vector.broadcast %4 : vector<8x1xf32> to vector<8x128xf32>
    %6 = vector.broadcast %1 : vector<1x128xf32> to vector<8x128xf32>
    %7 = arith.mulf %5, %6 : vector<8x128xf32>
    %8 = vector.broadcast %4 : vector<8x1xf32> to vector<8x128xf32>
    %9 = vector.broadcast %2 : vector<1x128xf32> to vector<8x128xf32>
    %10 = arith.mulf %8, %9 : vector<8x128xf32>
    %11 = vector.broadcast %4 : vector<8x1xf32> to vector<8x128xf32>
    %12 = vector.broadcast %3 : vector<1x128xf32> to vector<8x128xf32>
    %13 = arith.mulf %11, %12 : vector<8x128xf32>
    %14 = tpu.concatenate %7, %10, %13 in 0 : vector<8x128xf32>, vector<8x128xf32>, vector<8x128xf32> -> vector<24x128xf32>
    %15 = math.sin %14 : vector<24x128xf32>
    %16 = math.cos %14 : vector<24x128xf32>
    %17 = tpu.concatenate %15, %16 in 0 : vector<24x128xf32>, vector<24x128xf32> -> vector<48x128xf32>
    %18 = arith.truncf %17 : vector<48x128xf32> to vector<48x128xbf16>
    %c0_3 = arith.constant 0 : index
    %c0_4 = arith.constant 0 : index
    %19 = vector.load %arg11[%c0_3, %c0_4] : memref<128x8xf32, #tpu.memory_space<vmem>>, vector<128x1xf32>
    %c0_5 = arith.constant 0 : index
    %c0_6 = arith.constant 0 : index
    %20 = vector.load %arg3[%c0_5, %c0_6] : memref<128x48xbf16, #tpu.memory_space<vmem>>, vector<128x48xbf16>
    %cst = arith.constant dense<0.000000e+00> : vector<128x128xf32>
    %21 = tpu.matmul %20, %18, %cst {dimension_numbers = #tpu.dot_dimension_numbers<[1], [0], [0], [1], [0, 0, 1, 1], [], []>} : vector<128x48xbf16>, vector<48x128xbf16>, vector<128x128xf32> -> vector<128x128xf32>
    %22 = vector.broadcast %19 : vector<128x1xf32> to vector<128x128xf32>
    %23 = arith.addf %21, %22 : vector<128x128xf32>
    %cst_7 = arith.constant 0.000000e+00 : f32
    %24 = vector.broadcast %cst_7 : f32 to vector<128x128xf32>
    %25 = arith.maximumf %23, %24 : vector<128x128xf32>
    %26 = arith.truncf %25 : vector<128x128xf32> to vector<128x128xbf16>
    %c0_8 = arith.constant 0 : index
    %c1 = arith.constant 1 : index
    %27 = vector.load %arg11[%c0_8, %c1] : memref<128x8xf32, #tpu.memory_space<vmem>>, vector<128x1xf32>
    %c0_9 = arith.constant 0 : index
    %c0_10 = arith.constant 0 : index
    %28 = vector.load %arg4[%c0_9, %c0_10] : memref<128x128xbf16, #tpu.memory_space<vmem>>, vector<128x128xbf16>
    %cst_11 = arith.constant dense<0.000000e+00> : vector<128x128xf32>
    %29 = tpu.matmul %28, %26, %cst_11 {dimension_numbers = #tpu.dot_dimension_numbers<[1], [0], [0], [1], [0, 0, 1, 1], [], []>} : vector<128x128xbf16>, vector<128x128xbf16>, vector<128x128xf32> -> vector<128x128xf32>
    %30 = vector.broadcast %27 : vector<128x1xf32> to vector<128x128xf32>
    %31 = arith.addf %29, %30 : vector<128x128xf32>
    %cst_12 = arith.constant 0.000000e+00 : f32
    %32 = vector.broadcast %cst_12 : f32 to vector<128x128xf32>
    %33 = arith.maximumf %31, %32 : vector<128x128xf32>
    %34 = arith.truncf %33 : vector<128x128xf32> to vector<128x128xbf16>
    %c0_13 = arith.constant 0 : index
    %c2 = arith.constant 2 : index
    %35 = vector.load %arg11[%c0_13, %c2] : memref<128x8xf32, #tpu.memory_space<vmem>>, vector<128x1xf32>
    %c0_14 = arith.constant 0 : index
    %c0_15 = arith.constant 0 : index
    %36 = vector.load %arg5[%c0_14, %c0_15] : memref<128x128xbf16, #tpu.memory_space<vmem>>, vector<128x128xbf16>
    %cst_16 = arith.constant dense<0.000000e+00> : vector<128x128xf32>
    %37 = tpu.matmul %36, %34, %cst_16 {dimension_numbers = #tpu.dot_dimension_numbers<[1], [0], [0], [1], [0, 0, 1, 1], [], []>} : vector<128x128xbf16>, vector<128x128xbf16>, vector<128x128xf32> -> vector<128x128xf32>
    %38 = vector.broadcast %35 : vector<128x1xf32> to vector<128x128xf32>
    %39 = arith.addf %37, %38 : vector<128x128xf32>
    %cst_17 = arith.constant 0.000000e+00 : f32
    %40 = vector.broadcast %cst_17 : f32 to vector<128x128xf32>
    %41 = arith.maximumf %39, %40 : vector<128x128xf32>
    %42 = arith.truncf %41 : vector<128x128xf32> to vector<128x128xbf16>
    %c0_18 = arith.constant 0 : index
    %c3 = arith.constant 3 : index
    %43 = vector.load %arg11[%c0_18, %c3] : memref<128x8xf32, #tpu.memory_space<vmem>>, vector<128x1xf32>
    %c0_19 = arith.constant 0 : index
    %c0_20 = arith.constant 0 : index
    %44 = vector.load %arg6[%c0_19, %c0_20] : memref<128x128xbf16, #tpu.memory_space<vmem>>, vector<128x128xbf16>
    %cst_21 = arith.constant dense<0.000000e+00> : vector<128x128xf32>
    %45 = tpu.matmul %44, %42, %cst_21 {dimension_numbers = #tpu.dot_dimension_numbers<[1], [0], [0], [1], [0, 0, 1, 1], [], []>} : vector<128x128xbf16>, vector<128x128xbf16>, vector<128x128xf32> -> vector<128x128xf32>
    %46 = vector.broadcast %43 : vector<128x1xf32> to vector<128x128xf32>
    %47 = arith.addf %45, %46 : vector<128x128xf32>
    %cst_22 = arith.constant 0.000000e+00 : f32
    %48 = vector.broadcast %cst_22 : f32 to vector<128x128xf32>
    %49 = arith.maximumf %47, %48 : vector<128x128xf32>
    %50 = arith.truncf %49 : vector<128x128xf32> to vector<128x128xbf16>
    %c0_23 = arith.constant 0 : index
    %c0_24 = arith.constant 0 : index
    %51 = vector.load %arg7[%c0_23, %c0_24] : memref<128x48xbf16, #tpu.memory_space<vmem>>, vector<128x48xbf16>
    %cst_25 = arith.constant dense<0.000000e+00> : vector<128x128xf32>
    %52 = tpu.matmul %51, %18, %cst_25 {dimension_numbers = #tpu.dot_dimension_numbers<[1], [0], [0], [1], [0, 0, 1, 1], [], []>} : vector<128x48xbf16>, vector<48x128xbf16>, vector<128x128xf32> -> vector<128x128xf32>
    %c0_26 = arith.constant 0 : index
    %c0_27 = arith.constant 0 : index
    %53 = vector.load %arg8[%c0_26, %c0_27] : memref<128x128xbf16, #tpu.memory_space<vmem>>, vector<128x128xbf16>
    %cst_28 = arith.constant dense<0.000000e+00> : vector<128x128xf32>
    %54 = tpu.matmul %53, %50, %cst_28 {dimension_numbers = #tpu.dot_dimension_numbers<[1], [0], [0], [1], [0, 0, 1, 1], [], []>} : vector<128x128xbf16>, vector<128x128xbf16>, vector<128x128xf32> -> vector<128x128xf32>
    %55 = arith.addf %52, %54 : vector<128x128xf32>
    %c0_29 = arith.constant 0 : index
    %c4 = arith.constant 4 : index
    %56 = vector.load %arg11[%c0_29, %c4] : memref<128x8xf32, #tpu.memory_space<vmem>>, vector<128x1xf32>
    %57 = vector.broadcast %56 : vector<128x1xf32> to vector<128x128xf32>
    %58 = arith.addf %55, %57 : vector<128x128xf32>
    %cst_30 = arith.constant 0.000000e+00 : f32
    %59 = vector.broadcast %cst_30 : f32 to vector<128x128xf32>
    %60 = arith.maximumf %58, %59 : vector<128x128xf32>
    %61 = arith.truncf %60 : vector<128x128xf32> to vector<128x128xbf16>
    %c0_31 = arith.constant 0 : index
    %c5 = arith.constant 5 : index
    %62 = vector.load %arg11[%c0_31, %c5] : memref<128x8xf32, #tpu.memory_space<vmem>>, vector<128x1xf32>
    %c0_32 = arith.constant 0 : index
    %c0_33 = arith.constant 0 : index
    %63 = vector.load %arg9[%c0_32, %c0_33] : memref<128x128xbf16, #tpu.memory_space<vmem>>, vector<128x128xbf16>
    %cst_34 = arith.constant dense<0.000000e+00> : vector<128x128xf32>
    %64 = tpu.matmul %63, %61, %cst_34 {dimension_numbers = #tpu.dot_dimension_numbers<[1], [0], [0], [1], [0, 0, 1, 1], [], []>} : vector<128x128xbf16>, vector<128x128xbf16>, vector<128x128xf32> -> vector<128x128xf32>
    %65 = vector.broadcast %62 : vector<128x1xf32> to vector<128x128xf32>
    %66 = arith.addf %64, %65 : vector<128x128xf32>
    %cst_35 = arith.constant 0.000000e+00 : f32
    %67 = vector.broadcast %cst_35 : f32 to vector<128x128xf32>
    %68 = arith.maximumf %66, %67 : vector<128x128xf32>
    %69 = arith.truncf %68 : vector<128x128xf32> to vector<128x128xbf16>
    %c0_36 = arith.constant 0 : index
    %c0_37 = arith.constant 0 : index
    %70 = vector.load %arg10[%c0_36, %c0_37] : memref<8x128xbf16, #tpu.memory_space<vmem>>, vector<8x128xbf16>
    %cst_38 = arith.constant dense<0.000000e+00> : vector<8x128xf32>
    %71 = tpu.matmul %70, %69, %cst_38 {dimension_numbers = #tpu.dot_dimension_numbers<[1], [0], [0], [1], [0, 0, 1, 1], [], []>} : vector<8x128xbf16>, vector<128x128xbf16>, vector<8x128xf32> -> vector<8x128xf32>
    %c0_39 = arith.constant 0 : index
    %c6 = arith.constant 6 : index
    %72 = vector.load %arg11[%c0_39, %c6] : memref<128x8xf32, #tpu.memory_space<vmem>>, vector<8x1xf32>
    %73 = vector.broadcast %72 : vector<8x1xf32> to vector<8x128xf32>
    %74 = arith.addf %71, %73 : vector<8x128xf32>
    %75 = vector.extract_strided_slice %74 {offsets = [0, 0], sizes = [1, 128], strides = [1, 1]} : vector<8x128xf32> to vector<1x128xf32>
    %76 = vector.extract_strided_slice %74 {offsets = [1, 0], sizes = [1, 128], strides = [1, 1]} : vector<8x128xf32> to vector<1x128xf32>
    %77 = vector.extract_strided_slice %74 {offsets = [2, 0], sizes = [1, 128], strides = [1, 1]} : vector<8x128xf32> to vector<1x128xf32>
    %78 = vector.extract_strided_slice %74 {offsets = [3, 0], sizes = [1, 128], strides = [1, 1]} : vector<8x128xf32> to vector<1x128xf32>
    %79 = vector.extract_strided_slice %74 {offsets = [4, 0], sizes = [1, 128], strides = [1, 1]} : vector<8x128xf32> to vector<1x128xf32>
    %80 = vector.extract_strided_slice %74 {offsets = [5, 0], sizes = [1, 128], strides = [1, 1]} : vector<8x128xf32> to vector<1x128xf32>
    %81 = arith.mulf %75, %75 : vector<1x128xf32>
    %82 = arith.mulf %76, %76 : vector<1x128xf32>
    %83 = arith.addf %81, %82 : vector<1x128xf32>
    %84 = arith.mulf %77, %77 : vector<1x128xf32>
    %85 = arith.addf %83, %84 : vector<1x128xf32>
    %cst_40 = arith.constant 9.99999974E-5 : f32
    %86 = vector.broadcast %cst_40 : f32 to vector<1x128xf32>
    %87 = arith.maximumf %85, %86 : vector<1x128xf32>
    %88 = math.sqrt %87 : vector<1x128xf32>
    %89 = tpu.reciprocal %88 {approx = true} : vector<1x128xf32> -> vector<1x128xf32>
    %90 = math.sin %88 : vector<1x128xf32>
    %91 = math.cos %88 : vector<1x128xf32>
    %92 = arith.mulf %89, %90 : vector<1x128xf32>
    %93 = arith.mulf %89, %89 : vector<1x128xf32>
    %cst_41 = arith.constant 1.000000e+00 : f32
    %94 = vector.broadcast %cst_41 : f32 to vector<1x128xf32>
    %95 = arith.subf %94, %91 : vector<1x128xf32>
    %96 = arith.mulf %93, %95 : vector<1x128xf32>
    %97 = arith.mulf %89, %89 : vector<1x128xf32>
    %98 = arith.mulf %97, %89 : vector<1x128xf32>
    %99 = arith.subf %88, %90 : vector<1x128xf32>
    %100 = arith.mulf %98, %99 : vector<1x128xf32>
    %101 = arith.mulf %76, %3 : vector<1x128xf32>
    %102 = arith.mulf %77, %2 : vector<1x128xf32>
    %103 = arith.subf %101, %102 : vector<1x128xf32>
    %104 = arith.mulf %77, %1 : vector<1x128xf32>
    %105 = arith.mulf %75, %3 : vector<1x128xf32>
    %106 = arith.subf %104, %105 : vector<1x128xf32>
    %107 = arith.mulf %75, %2 : vector<1x128xf32>
    %108 = arith.mulf %76, %1 : vector<1x128xf32>
    %109 = arith.subf %107, %108 : vector<1x128xf32>
    %110 = arith.mulf %75, %1 : vector<1x128xf32>
    %111 = arith.mulf %76, %2 : vector<1x128xf32>
    %112 = arith.addf %110, %111 : vector<1x128xf32>
    %113 = arith.mulf %77, %3 : vector<1x128xf32>
    %114 = arith.addf %112, %113 : vector<1x128xf32>
    %115 = arith.mulf %92, %103 : vector<1x128xf32>
    %116 = arith.addf %1, %115 : vector<1x128xf32>
    %117 = arith.mulf %75, %114 : vector<1x128xf32>
    %118 = arith.mulf %1, %85 : vector<1x128xf32>
    %119 = arith.subf %117, %118 : vector<1x128xf32>
    %120 = arith.mulf %96, %119 : vector<1x128xf32>
    %121 = arith.addf %116, %120 : vector<1x128xf32>
    %122 = arith.mulf %92, %106 : vector<1x128xf32>
    %123 = arith.addf %2, %122 : vector<1x128xf32>
    %124 = arith.mulf %76, %114 : vector<1x128xf32>
    %125 = arith.mulf %2, %85 : vector<1x128xf32>
    %126 = arith.subf %124, %125 : vector<1x128xf32>
    %127 = arith.mulf %96, %126 : vector<1x128xf32>
    %128 = arith.addf %123, %127 : vector<1x128xf32>
    %129 = arith.mulf %92, %109 : vector<1x128xf32>
    %130 = arith.addf %3, %129 : vector<1x128xf32>
    %131 = arith.mulf %77, %114 : vector<1x128xf32>
    %132 = arith.mulf %3, %85 : vector<1x128xf32>
    %133 = arith.subf %131, %132 : vector<1x128xf32>
    %134 = arith.mulf %96, %133 : vector<1x128xf32>
    %135 = arith.addf %130, %134 : vector<1x128xf32>
    %136 = arith.mulf %76, %80 : vector<1x128xf32>
    %137 = arith.mulf %77, %79 : vector<1x128xf32>
    %138 = arith.subf %136, %137 : vector<1x128xf32>
    %139 = arith.mulf %77, %78 : vector<1x128xf32>
    %140 = arith.mulf %75, %80 : vector<1x128xf32>
    %141 = arith.subf %139, %140 : vector<1x128xf32>
    %142 = arith.mulf %75, %79 : vector<1x128xf32>
    %143 = arith.mulf %76, %78 : vector<1x128xf32>
    %144 = arith.subf %142, %143 : vector<1x128xf32>
    %145 = arith.mulf %75, %78 : vector<1x128xf32>
    %146 = arith.mulf %76, %79 : vector<1x128xf32>
    %147 = arith.addf %145, %146 : vector<1x128xf32>
    %148 = arith.mulf %77, %80 : vector<1x128xf32>
    %149 = arith.addf %147, %148 : vector<1x128xf32>
    %150 = arith.mulf %96, %138 : vector<1x128xf32>
    %151 = arith.addf %78, %150 : vector<1x128xf32>
    %152 = arith.mulf %75, %149 : vector<1x128xf32>
    %153 = arith.mulf %78, %85 : vector<1x128xf32>
    %154 = arith.subf %152, %153 : vector<1x128xf32>
    %155 = arith.mulf %100, %154 : vector<1x128xf32>
    %156 = arith.addf %151, %155 : vector<1x128xf32>
    %157 = arith.mulf %96, %141 : vector<1x128xf32>
    %158 = arith.addf %79, %157 : vector<1x128xf32>
    %159 = arith.mulf %76, %149 : vector<1x128xf32>
    %160 = arith.mulf %79, %85 : vector<1x128xf32>
    %161 = arith.subf %159, %160 : vector<1x128xf32>
    %162 = arith.mulf %100, %161 : vector<1x128xf32>
    %163 = arith.addf %158, %162 : vector<1x128xf32>
    %164 = arith.mulf %96, %144 : vector<1x128xf32>
    %165 = arith.addf %80, %164 : vector<1x128xf32>
    %166 = arith.mulf %77, %149 : vector<1x128xf32>
    %167 = arith.mulf %80, %85 : vector<1x128xf32>
    %168 = arith.subf %166, %167 : vector<1x128xf32>
    %169 = arith.mulf %100, %168 : vector<1x128xf32>
    %170 = arith.addf %165, %169 : vector<1x128xf32>
    %171 = arith.addf %121, %156 : vector<1x128xf32>
    %172 = arith.addf %128, %163 : vector<1x128xf32>
    %173 = arith.addf %135, %170 : vector<1x128xf32>
    %174 = arith.cmpf one, %171, %171 : vector<1x128xf32>
    %175 = arith.select %174, %1, %171 : vector<1x128xi1>, vector<1x128xf32>
    %c0_42 = arith.constant 0 : index
    %c0_43 = arith.constant 0 : index
    %176 = vector.load %arg12[%c0_42, %c0_43] : memref<3x128xf32, #tpu.memory_space<vmem>>, vector<1x128xf32>
    tpu.vector_store %arg12[%c0_42, %c0_43], %175 {strides = array<i32>} : memref<3x128xf32, #tpu.memory_space<vmem>>, vector<1x128xf32>,
    %177 = arith.cmpf one, %172, %172 : vector<1x128xf32>
    %178 = arith.select %177, %2, %172 : vector<1x128xi1>, vector<1x128xf32>
    %c1_44 = arith.constant 1 : index
    %c0_45 = arith.constant 0 : index
    %179 = vector.load %arg12[%c1_44, %c0_45] : memref<3x128xf32, #tpu.memory_space<vmem>>, vector<1x128xf32>
    tpu.vector_store %arg12[%c1_44, %c0_45], %178 {strides = array<i32>} : memref<3x128xf32, #tpu.memory_space<vmem>>, vector<1x128xf32>,
    %180 = arith.cmpf one, %173, %173 : vector<1x128xf32>
    %181 = arith.select %180, %3, %173 : vector<1x128xi1>, vector<1x128xf32>
    %c2_46 = arith.constant 2 : index
    %c0_47 = arith.constant 0 : index
    %182 = vector.load %arg12[%c2_46, %c0_47] : memref<3x128xf32, #tpu.memory_space<vmem>>, vector<1x128xf32>
    tpu.vector_store %arg12[%c2_46, %c0_47], %181 {strides = array<i32>} : memref<3x128xf32, #tpu.memory_space<vmem>>, vector<1x128xf32>,
    return
  }
  func.func @transform_0(%arg0: i32) -> (i32, i32) {
    %c0_i32 = arith.constant 0 : i32
    %c0_i32_0 = arith.constant 0 : i32
    return %c0_i32, %arg0 : i32, i32
  }
  func.func @transform_1(%arg0: i32) -> (i32, i32) {
    %c0_i32 = arith.constant 0 : i32
    %c0_i32_0 = arith.constant 0 : i32
    %c0_i32_1 = arith.constant 0 : i32
    return %c0_i32, %c0_i32_0 : i32, i32
  }
  func.func @transform_2(%arg0: i32) -> (i32, i32) {
    %c0_i32 = arith.constant 0 : i32
    %c0_i32_0 = arith.constant 0 : i32
    %c0_i32_1 = arith.constant 0 : i32
    return %c0_i32, %c0_i32_0 : i32, i32
  }
  func.func @transform_3(%arg0: i32) -> (i32, i32) {
    %c0_i32 = arith.constant 0 : i32
    %c0_i32_0 = arith.constant 0 : i32
    %c0_i32_1 = arith.constant 0 : i32
    return %c0_i32, %c0_i32_0 : i32, i32
  }
  func.func @transform_4(%arg0: i32) -> (i32, i32) {
    %c0_i32 = arith.constant 0 : i32
    %c0_i32_0 = arith.constant 0 : i32
    %c0_i32_1 = arith.constant 0 : i32
    return %c0_i32, %c0_i32_0 : i32, i32
  }
  func.func @transform_5(%arg0: i32) -> (i32, i32) {
    %c0_i32 = arith.constant 0 : i32
    %c0_i32_0 = arith.constant 0 : i32
    %c0_i32_1 = arith.constant 0 : i32
    return %c0_i32, %c0_i32_0 : i32, i32
  }
  func.func @transform_6(%arg0: i32) -> (i32, i32) {
    %c0_i32 = arith.constant 0 : i32
    %c0_i32_0 = arith.constant 0 : i32
    %c0_i32_1 = arith.constant 0 : i32
    return %c0_i32, %c0_i32_0 : i32, i32
  }
  func.func @transform_7(%arg0: i32) -> (i32, i32) {
    %c0_i32 = arith.constant 0 : i32
    %c0_i32_0 = arith.constant 0 : i32
    %c0_i32_1 = arith.constant 0 : i32
    return %c0_i32, %c0_i32_0 : i32, i32
  }
  func.func @transform_8(%arg0: i32) -> (i32, i32) {
    %c0_i32 = arith.constant 0 : i32
    %c0_i32_0 = arith.constant 0 : i32
    %c0_i32_1 = arith.constant 0 : i32
    return %c0_i32, %c0_i32_0 : i32, i32
  }
  func.func @transform_9(%arg0: i32) -> (i32, i32) {
    %c0_i32 = arith.constant 0 : i32
    %c0_i32_0 = arith.constant 0 : i32
    %c0_i32_1 = arith.constant 0 : i32
    return %c0_i32, %c0_i32_0 : i32, i32
  }
  func.func @transform_10(%arg0: i32) -> (i32, i32) {
    %c0_i32 = arith.constant 0 : i32
    %c0_i32_0 = arith.constant 0 : i32
    %c0_i32_1 = arith.constant 0 : i32
    return %c0_i32, %c0_i32_0 : i32, i32
  }
  func.func @transform_11(%arg0: i32) -> (i32, i32) {
    %c0_i32 = arith.constant 0 : i32
    %c0_i32_0 = arith.constant 0 : i32
    return %c0_i32, %arg0 : i32, i32
  }
}

</mosaic_0001>

<bundles_post_ra>
// kernel: tpu_custom_call.1
= control target key start
LH: loop header
LB: loop body
LE: loop exit
PB: predicated region body
PF: predicated region fallthrough
CT: control target
= control target key end

     0   :  { %s5179_s0 = inlined_call_operand.vmem [shape: f32[3,256], index: 0, kind: input, shape index: {}]   ;;  %s5180_s1 = inlined_call_operand.vmem [shape: f32[8,1], index: 1, kind: input, shape index: {}]   ;;  %s5181_s2 = inlined_call_operand.vmem [shape: bf16[128,48], index: 2, kind: input, shape index: {}]   ;;  %s5182_s3 = inlined_call_operand.vmem [shape: bf16[128,128], index: 3, kind: input, shape index: {}]   ;;  %s5183_s4 = inlined_call_operand.vmem [shape: bf16[128,128], index: 4, kind: input, shape index: {}]   ;;  %s5184_s5 = inlined_call_operand.vmem [shape: bf16[128,128], index: 5, kind: input, shape index: {}]   ;;  %s5185_s6 = inlined_call_operand.vmem [shape: bf16[128,48], index: 6, kind: input, shape index: {}]   ;;  %s5186_s7 = inlined_call_operand.vmem [shape: bf16[128,128], index: 7, kind: input, shape index: {}]   ;;  %s5187_s8 = inlined_call_operand.hbm [shape: bf16[128,128], index: 8, kind: input, shape index: {}]   ;;  %s5188_s9 = inlined_call_operand.vmem [shape: bf16[8,128], index: 9, kind: input, shape index: {}]   ;;  %s5189_s10 = inlined_call_operand.vmem [shape: f32[128,8], index: 10, kind: input, shape index: {}]   ;;  %s5190_s11 = inlined_call_operand.hbm [shape: f32[3,256], index: 11, kind: output, shape index: {}]  }
   0x1   :  { %5191 = sst [smem:[#allocation8_spill]] %s5180_s1 }
   0x2   :  { %16 = vsyncpa [#allocation3], 0 }
   0x3   :  { %17 = vsyncpa [#allocation4], 0 }
   0x4   :  { %19 = vsyncpa [#allocation4 + $0x1], 0  ;;  %s4029_s17 = smov 0   ;;  %s4031_s18 = smov 0  }
   0x5   :  { %s4033_s19 = smov 0   ;;  %s4035_s20 = smov 0  }
   0x6 LB: > { %s4050_s21 = sadd.s32 4294967295, %s3951_s20   ;;  %s3395_s22 = sadd.s32 4294967294, %s3951_s20   ;;  %s3951_s20 = sphi %s4035_s20, %s5204_s20   ;;  %s3947_s19 = sphi %s4033_s19, %s5203_s19   ;;  %s3943_s18 = sphi %s4031_s18, %s5202_s18   ;;  %s3939_s17 = sphi %s4029_s17, %s5201_s17  }
   0x7   : > { %s4054_s23 = sadd.s32 1, %s3951_s20   ;;  %s268_s24 = sadd.s32 1, %s3947_s19 }
   0x8   : > { %s265_s25 = ssub.s32 %s3951_s20, %s4054_s23  ;;  %p278_p0 = scmp.ne.s32.totalorder %s3947_s19, %s3943_s18 }
   0x9   : > { %p266_p1 = scmp.eq.s32.totalorder %s265_s25, 0  ;;  %p279_p2 = scmp.eq.s32.totalorder %s4050_s21, 1 }
   0xa   : > { %p284_p3 = scmp.ne.s32.totalorder %s3943_s18, %s3939_s17  ;;  %p285_p4 = scmp.eq.s32.totalorder %s3395_s22, 1 }
   0xb   : > { %s4065_s26 = scalar_select %p266_p1, %s3947_s19, %s268_s24  }
   0xc   : > { %p4067_p5 = por %p279_p2, %p278_p0  ;;  %p4071_p6 = por %p285_p4, %p284_p3 }
   0xd   : > { %p3396_p7 = scmp.ge.s32.totalorder %s3951_s20, 1  ;;  %p292_p8 = scmp.lt.s32.totalorder %s3951_s20, 3 }
   0xe   : > { %p3757_p9 = scmp.eq.s32.totalorder %s4050_s21, 0  ;;  %s324_s12 = sshll.u32 %s5187_s8, 4  ;;  %s325_s12 = int_to_ptr.hbm [resolvable:$true] %s324_s12 }
   0xf   : > { %p293_p10 = pnand %p3396_p7, %p292_p8  ;;  %s3953_s13 = smov [#allocation2]  }
  0x10   : > { %s326_s14 = sshll.u32 %s3953_s13, 4  ;;  %s3954_s15 = smov 64   ;;  %s327_s14 = int_to_ptr.vmem [resolvable:$true] %s326_s14 }
  0x11   : > { %p3749_p11 = pneg %p293_p10  ;;  %s3955_s16 = smov 4  }
  0x12   : > { %355 = sbr.rel (%p293_p10) target bundleno = 2224 (0x8b0), region = 64 }
  0x13   : > { %p3750_p12 = pnand %p3757_p9, %p3749_p11 }
  0x15   : > { %3752 = dma.hbm_to_vmem [thread:$0]  (!%p3750_p12), %s325_s12, 1024, %s327_s14, [#allocation3], %s3954_s15, %s3954_s15, %s3955_s16  }
  0x17   : > { %3930 = dma.done.wait (%p3757_p9), [#allocation3], 1024  }
  0x18   : > { %3932 = vsyncadd (%p3757_p9), [#allocation3], 4294966272  ;;  %v3956_v0 = vmov 0   ;;  %s5194_s1 = sld [smem:[#allocation8_spill]]  ;;  %v1357_v2 = vld [vmem:[%s5189_s10 + $0x70] sm:$0xff]  ;;  %v1354_v3 = vld [vmem:[%s5189_s10 + $0x58] sm:$0xff] }
  0x19   : > { %3808 = vset.pattern.permute.xlu0 %v3956_v0  ;;  %3809 = vset.pattern.permute.xlu1 %v3956_v0  ;;  %v1349_v4 = vld [vmem:[%s5189_s10 + $0x30] sm:$0xff]  ;;  %v1348_v5 = vld [vmem:[%s5189_s10 + $0x28] sm:$0xff]  ;;  %v1343_v6 = vld [vmem:[%s5189_s10] sm:$0xff]  ;;  %p395_p13 = scmp.lt.s32.totalorder %s4050_s21, 1  ;;  %v3957_v50 = vmov 920167782  }
  0x1a   : > { %3810 = vset.pattern.permute.xlu2 %v3956_v0  ;;  %v1358_v28 = vld [vmem:[%s5189_s10 + $0x78] sm:$0xff]  ;;  %v1355_v41 = vld [vmem:[%s5189_s10 + $0x60] sm:$0xff]  ;;  %v3958_v53 = vmov 1326507024   ;;  %v3959_v56 = vmov 2102212464  }
  0x1b   : > { %s396_s25 = scalar_select %p395_p13, %s4050_s21, 1  ;;  %1452 = vperm.xlu1 %3809, %v1358_v28  }
  0x1c   : > { %s3668_s12 = sshll.u32 %s4050_s21, 2  ;;  %s3905_s13 = scalar_lea.hbm %s5190_s11, 8 }
  0x1d   : > { %s3402_s29 = sshll.u32 %s396_s25, 2  ;;  %s3319_s15 = scalar_lea.hbm %s5190_s11, %s3668_s12 }
  0x1e   : > { %v401_v1 = vld [vmem:[%s5194_s1] sm:$0xff]  ;;  %s4113_s1 = scalar_lea.vmem %s5179_s0, %s3402_s29  ;;  %s3323_s22 = sshll.u32 %s3319_s15, 4  ;;  %s3324_s22 = int_to_ptr.hbm [resolvable:$true] %s3323_s22 }
  0x1f   : > { %404 = vperm.xlu0 %3808, %v401_v1   ;;  %v400_v7 = vld [vmem:[%s4113_s1] sm:$0x7]  ;;  %s3899_s25 = sshra.s32 %s3324_s22, 4  ;;  %s3900_s25 = int_to_ptr.hbm [resolvable:$true] %s3899_s25 }
  0x20   : > { %v407_v8 = vperm.slane %v400_v7, 0  ;;  %v409_v9 = vperm.slane %v400_v7, 1  ;;  %v411_v10 = vperm.slane %v400_v7, 2  ;;  %v3960_v7 = vmov 683565275   ;;  %s3901_s29 = scalar_lea.hbm %s3900_s25, 4  ;;  %p3906_p3 = scmp.lt.s32.totalorder %s3900_s25, %s5190_s11 }
  0x21   : > { %p3902_p0 = scmp.ne.s32.totalorder %s3900_s25, %s3901_s29  ;;  %p3907_p4 = scmp.lt.s32.totalorder %s3905_s13, %s3901_s29 }
  0x23   : > { %1437 = vperm.xlu1 %3809, %v1355_v41   ;;  %p3903_p1 = pnand %p3902_p0, %p4067_p5  ;;  %p3908_p7 = por %p3907_p4, %p3906_p3 }
  0x25   : > { %p3904_p2 = pneg %p3903_p1 }
  0x27   : > { %1447 = vperm.xlu0 %3808, %v1357_v2   ;;  %p3909_p8 = pnand %p3908_p7, %p3904_p2 }
  0x2f   : > { %1432 = vperm.xlu0 %3808, %v1354_v3  }
  0x37   : > { %1407 = vperm.xlu0 %3808, %v1349_v4  }
  0x3f   : > { %1402 = vperm.xlu0 %3808, %v1348_v5  }
  0x47   : > { %1377 = vperm.xlu0 %3808, %v1343_v6  }
  0x91   : > { %v405_v11 = vpop.permute.xlu0 %404 }
  0x92   : > { %v4116_v12 = vmul.f32 %v407_v8, %v405_v11  ;;  %v4118_v13 = vmul.f32 %v409_v9, %v405_v11  ;;  %v4120_v14 = vmul.f32 %v411_v10, %v405_v11  ;;  %v3961_v9 = vmov 2475754826  }
  0x94   : > { %v416_v15 = vand.u32 2139095040, %v4116_v12  ;;  %v571_v16 = vand.u32 2139095040, %v4118_v13  ;;  %v726_v17 = vand.u32 2139095040, %v4120_v14  ;;  %v568_v18 = vand.u32 2147483647, %v4118_v13 }
  0x95   : > { %v723_v19 = vand.u32 2147483647, %v4120_v14  ;;  %v413_v36 = vand.u32 2147483647, %v4116_v12 }
  0x96   : > { %v417_v20 = vshrl.u32 %v416_v15, 23  ;;  %v572_v21 = vshrl.u32 %v571_v16, 23  ;;  %v727_v22 = vshrl.u32 %v726_v17, 23  ;;  %v575_v23 = vand.u32 8388607, %v568_v18 }
  0x97   : > { %v730_v27 = vand.u32 8388607, %v723_v19  ;;  %v4148_v45 = vand.u32 8388607, %v413_v36  ;;  %v3962_v16 = vmov 2131351028  }
  0x98   : > { %v3403_v24 = vadd.s32 4294967169, %v417_v20  ;;  %v3406_v25 = vadd.s32 4294967169, %v572_v21  ;;  %v3409_v26 = vadd.s32 4294967169, %v727_v22  ;;  %v576_v32 = vor.u32 8388608, %v575_v23 }
  0x99   : > { %v731_v33 = vor.u32 8388608, %v730_v27 }
  0x9a   : > { %v423_v29 = vadd.s32 1, %v3403_v24  ;;  %v578_v30 = vadd.s32 1, %v3406_v25  ;;  %v733_v31 = vadd.s32 1, %v3409_v26  ;;  %v4135_v39 = vshll.u32 %v576_v32, 8 }
  0x9b   : > { %v4142_v42 = vshll.u32 %v731_v33, 8 }
  0x9c   : > { %vm424_vm0 = vcmp.gt.s32.totalorder %v423_v29, 0  ;;  %vm579_vm1 = vcmp.gt.s32.totalorder %v578_v30, 0  ;;  %vm734_vm2 = vcmp.gt.s32.totalorder %v733_v31, 0  ;;  %v4158_v49 = vand.u32 65535, %v4135_v39 }
  0x9d   : > { %v580_v34 = vsel %vm579_vm1, %v578_v30, 0  ;;  %v735_v35 = vsel %vm734_vm2, %v733_v31, 0  ;;  %v425_v37 = vsel %vm424_vm0, %v423_v29, 0  ;;  %v4169_v59 = vshrl.u32 %v4135_v39, 16 }
  0x9e   : > { %v582_v38 = vand.u32 31, %v580_v34  ;;  %v4137_v40 = vand.u32 31, %v735_v35  ;;  %v4144_v43 = vand.u32 31, %v425_v37  ;;  %v4150_v46 = vshrl.u32 %v425_v37, 5 }
  0x9f   : > { %v4152_v47 = vshrl.u32 %v580_v34, 5  ;;  %v4163_v55 = vshrl.u32 %v735_v35, 5  ;;  %v4172_v60 = vand.u32 65535, %v4142_v42 }
  0xa0   : > { %v583_v44 = vsub.s32 32, %v582_v38  ;;  %v4155_v48 = vsub.s32 32, %v4137_v40  ;;  %v597_v52 = vshll.u32 %v3957_v50, %v582_v38  ;;  %v594_v57 = vshll.u32 %v3959_v56, %v582_v38 }
  0xa1   : > { %v4175_v61 = vsub.s32 32, %v4144_v43  ;;  %v4179_v62 = vshll.u32 %v3959_v56, %v4144_v43  ;;  %v749_v1 = vshll.u32 %v3959_v56, %v4137_v40  ;;  %v4185_v2 = vshll.u32 %v3957_v50, %v4144_v43 }
  0xa2   : > { %v595_v51 = vshrl.u32 %v3957_v50, %v583_v44  ;;  %v598_v54 = vshrl.u32 %v3958_v53, %v583_v44  ;;  %v750_v58 = vshrl.u32 %v3957_v50, %v4155_v48  ;;  %vm603_vm3 = vcmp.lt.s32.totalorder %v4152_v47, 4 }
  0xa3   : > { %v753_v4 = vshrl.u32 %v3958_v53, %v4155_v48  ;;  %v752_v6 = vshll.u32 %v3957_v50, %v4137_v40  ;;  %v585_v8 = vshll.u32 %v3960_v7, %v582_v38  ;;  %v586_v10 = vshrl.u32 %v3961_v9, %v583_v44 }
  0xa4   : > { %v599_v63 = vor.u32 %v598_v54, %v597_v52  ;;  %v596_v3 = vor.u32 %v595_v51, %v594_v57  ;;  %v4190_v5 = vor.u32 %v750_v58, %v749_v1  ;;  %vm758_vm4 = vcmp.lt.s32.totalorder %v4163_v55, 4 }
  0xa5   : > { %v588_v15 = vshll.u32 %v3961_v9, %v582_v38  ;;  %v589_v17 = vshrl.u32 %v3962_v16, %v583_v44  ;;  %v584_v20 = vshrl.u32 %v3960_v7, %v583_v44  ;;  %v587_v21 = vor.u32 %v586_v10, %v585_v8 }
  0xa6   : > { %v613_v11 = vsel %vm603_vm3, %v599_v63, 1326507024  ;;  %v591_v22 = vshll.u32 %v3962_v16, %v582_v38  ;;  %v592_v23 = vshrl.u32 %v3959_v56, %v583_v44  ;;  %v609_v24 = vsel %vm603_vm3, %v596_v3, 920167782 }
  0xa7   : > { %v754_v25 = vor.u32 %v753_v4, %v752_v6  ;;  %v590_v26 = vor.u32 %v589_v17, %v588_v15  ;;  %vm602_vm5 = vcmp.lt.s32.totalorder %v4152_v47, 3  ;;  %v4210_v27 = vsel %vm758_vm4, %v4190_v5, 920167782 }
  0xa8   : > { %v593_v28 = vor.u32 %v592_v23, %v591_v22  ;;  %vm600_vm6 = vcmp.lt.s32.totalorder %v4152_v47, 1  ;;  %v614_v29 = vsel %vm602_vm5, %v596_v3, %v613_v11  ;;  %vm601_vm7 = vcmp.lt.s32.totalorder %v4152_v47, 2 }
  0xa9   : > { %v608_v30 = vsel %vm600_vm6, %v587_v21, %v590_v26  ;;  %v740_v31 = vshll.u32 %v3960_v7, %v4137_v40  ;;  %v741_v32 = vshrl.u32 %v3961_v9, %v4155_v48  ;;  %v744_v37 = vshrl.u32 %v3962_v16, %v4155_v48 }
  0xaa   : > { %v605_v33 = vsel %vm603_vm3, %v593_v28, 2102212464  ;;  %v610_v34 = vsel %vm602_vm5, %v593_v28, %v609_v24  ;;  %v612_v35 = vsel %vm600_vm6, %v590_v26, %v593_v28  ;;  %v604_v38 = vsel %vm600_vm6, %v584_v20, %v587_v21 }
  0xab   : > { %v611_v41 = vsel %vm601_vm7, %v608_v30, %v610_v34  ;;  %v615_v44 = vsel %vm601_vm7, %v612_v35, %v614_v29  ;;  %v743_v51 = vshll.u32 %v3961_v9, %v4137_v40  ;;  %v606_v52 = vsel %vm602_vm5, %v590_v26, %v605_v33 }
  0xac   : > { %v619_v54 = vand.u32 65535, %v615_v44  ;;  %v620_v57 = vshrl.u32 %v615_v44, 16  ;;  %v641_v58 = vand.u32 65535, %v611_v41  ;;  %v768_v63 = vsel %vm758_vm4, %v754_v25, 1326507024 }
  0xad   : > { %v642_v1 = vshrl.u32 %v611_v41, 16  ;;  %v739_v3 = vshrl.u32 %v3960_v7, %v4155_v48  ;;  %v746_v4 = vshll.u32 %v3962_v16, %v4137_v40  ;;  %v742_v10 = vor.u32 %v741_v32, %v740_v31 }
  0xae   : > { %v622_v6 = vmul.u32 %v620_v57, %v4158_v49  ;;  %v623_v8 = vmul.u32 %v619_v54, %v4169_v59  ;;  %v4242_v11 = vor.u32 %v744_v37, %v743_v51  ;;  %v4246_v15 = vsel %vm601_vm7, %v604_v38, %v606_v52 }
  0xaf   : > { %v644_v17 = vmul.u32 %v642_v1, %v4158_v49  ;;  %v645_v20 = vmul.u32 %v641_v58, %v4169_v59  ;;  %v747_v21 = vshrl.u32 %v3959_v56, %v4155_v48  ;;  %v621_v40 = vmul.u32 %v619_v54, %v4158_v49 }
  0xb0   : > { %v624_v22 = vmul.u32 %v620_v57, %v4169_v59  ;;  %v625_v23 = vshll.u32 %v622_v6, 16  ;;  %vm755_vm8 = vcmp.lt.s32.totalorder %v4163_v55, 1  ;;  %v626_v24 = vshrl.u32 %v622_v6, 16 }
  0xb1   : > { %v643_v25 = vmul.u32 %v641_v58, %v4158_v49  ;;  %v646_v47 = vmul.u32 %v642_v1, %v4169_v59  ;;  %v647_v26 = vshll.u32 %v644_v17, 16  ;;  %v627_v28 = vshll.u32 %v623_v8, 16 }
  0xb2   : > { %vm629_vm9 = vc.u32 %v621_v40, %v625_v23  ;;  %v631_v29 = vadd.s32 %v625_v23, %v621_v40  ;;  %v649_v30 = vshll.u32 %v645_v20, 16  ;;  %v748_v32 = vor.u32 %v747_v21, %v746_v4 }
  0xb3   : > { %v630_v31 = vsel %vm629_vm9, 1, %v3956_v0  ;;  %vm651_vm10 = vc.u32 %v643_v25, %v647_v26  ;;  %v653_v48 = vadd.s32 %v647_v26, %v643_v25  ;;  %v628_v33 = vshrl.u32 %v623_v8, 16 }
  0xb4   : > { %v632_v34 = vadd.s32 %v630_v31, %v624_v22  ;;  %vm633_vm11 = vc.u32 %v631_v29, %v627_v28  ;;  %v652_v35 = vsel %vm651_vm10, 1, %v3956_v0  ;;  %v648_v49 = vshrl.u32 %v644_v17, 16 }
  0xb5   : > { %v634_v37 = vsel %vm633_vm11, 1, %v3956_v0  ;;  %v654_v38 = vadd.s32 %v652_v35, %v646_v47  ;;  %vm655_vm12 = vc.u32 %v653_v48, %v649_v30  ;;  %vm757_vm13 = vcmp.lt.s32.totalorder %v4163_v55, 3 }
  0xb6   : > { %v636_v59 = vadd.s32 %v634_v37, %v632_v34  ;;  %v656_v41 = vsel %vm655_vm12, 1, %v3956_v0  ;;  %v763_v44 = vsel %vm755_vm8, %v742_v10, %v4242_v11  ;;  %vm756_vm14 = vcmp.lt.s32.totalorder %v4163_v55, 2 }
  0xb7   : > { %v658_v51 = vadd.s32 %v656_v41, %v654_v38  ;;  %v765_v52 = vsel %vm757_vm13, %v748_v32, %v4210_v27  ;;  %v767_v54 = vsel %vm755_vm8, %v4242_v11, %v748_v32  ;;  %v650_v58 = vshrl.u32 %v645_v20, 16 }
  0xb8   : > { %v637_v57 = vadd.s32 %v636_v59, %v626_v24  ;;  %v766_v1 = vsel %vm756_vm14, %v763_v44, %v765_v52  ;;  %v769_v4 = vsel %vm757_vm13, %v4190_v5, %v768_v63  ;;  %v4277_v6 = vadd.s32 %v653_v48, %v649_v30 }
  0xb9   : > { %v659_v8 = vadd.s32 %v658_v51, %v648_v49  ;;  %v770_v17 = vsel %vm756_vm14, %v767_v54, %v769_v4  ;;  %v796_v27 = vand.u32 65535, %v766_v1  ;;  %v797_v23 = vshrl.u32 %v766_v1, 16 }
  0xba   : > { %v4281_v21 = vadd.s32 %v637_v57, %v628_v33  ;;  %v774_v40 = vand.u32 65535, %v770_v17  ;;  %v775_v22 = vshrl.u32 %v770_v17, 16  ;;  %v440_v20 = vshrl.u32 %v3957_v50, %v4175_v61 }
  0xbb   : > { %v4287_v24 = vshrl.u32 %v3958_v53, %v4175_v61  ;;  %v660_v5 = vadd.s32 %v659_v8, %v650_v58  ;;  %v773_v63 = vshrl.u32 %v4142_v42, 16  ;;  %v661_v25 = vmul.u32 %v4135_v39, %v4246_v15 }
  0xbc   : > { %vm663_vm15 = vc.u32 %v4281_v21, %v4277_v6  ;;  %v759_v47 = vsel %vm755_vm8, %v739_v3, %v742_v10  ;;  %v777_v26 = vmul.u32 %v775_v22, %v4172_v60  ;;  %v799_v30 = vmul.u32 %v797_v23, %v4172_v60 }
  0xbd   : > { %v664_v28 = vadd.s32 1, %v660_v5  ;;  %v778_v29 = vmul.u32 %v774_v40, %v773_v63  ;;  %v800_v31 = vmul.u32 %v796_v27, %v773_v63  ;;  %v760_v48 = vsel %vm758_vm4, %v748_v32, 2102212464 }
  0xbe   : > { %v776_v33 = vmul.u32 %v774_v40, %v4172_v60  ;;  %v780_v34 = vshll.u32 %v777_v26, 16  ;;  %v798_v39 = vmul.u32 %v796_v27, %v4172_v60  ;;  %v779_v35 = vmul.u32 %v775_v22, %v773_v63 }
  0xbf   : > { %v665_v15 = vsel %vm663_vm15, %v664_v28, %v660_v5  ;;  %v801_v37 = vmul.u32 %v797_v23, %v773_v63  ;;  %v802_v49 = vshll.u32 %v799_v30, 16  ;;  %v782_v10 = vshll.u32 %v778_v29, 16 }
  0xc0   : > { %v666_v3 = vadd.s32 %v665_v15, %v661_v25  ;;  %vm784_vm0 = vc.u32 %v776_v33, %v780_v34  ;;  %v786_v38 = vadd.s32 %v780_v34, %v776_v33  ;;  %v804_v41 = vshll.u32 %v800_v31, 16 }
  0xc1   : > { %v785_v59 = vsel %vm784_vm0, 1, %v3956_v0  ;;  %vm806_vm1 = vc.u32 %v798_v39, %v802_v49  ;;  %v808_v44 = vadd.s32 %v802_v49, %v798_v39  ;;  %v761_v60 = vsel %vm757_vm13, %v4242_v11, %v760_v48 }
  0xc2   : > { %v667_v51 = vadd.s32 536870912, %v666_v3  ;;  %v787_v32 = vadd.s32 %v785_v59, %v779_v35  ;;  %vm788_vm2 = vc.u32 %v786_v38, %v782_v10  ;;  %v807_v52 = vsel %vm806_vm1, 1, %v3956_v0 }
  0xc3   : > { %v789_v54 = vsel %vm788_vm2, 1, %v3956_v0  ;;  %v809_v57 = vadd.s32 %v807_v52, %v801_v37  ;;  %vm810_vm3 = vc.u32 %v808_v44, %v804_v41  ;;  %v781_v1 = vshrl.u32 %v777_v26, 16 }
  0xc4   : > { %v4308_v58 = vshrl.u32 %v667_v51, 30  ;;  %v791_v4 = vadd.s32 %v789_v54, %v787_v32  ;;  %v811_v8 = vsel %vm810_vm3, 1, %v3956_v0  ;;  %v441_v17 = vor.u32 %v440_v20, %v4179_v62 }
  0xc5   : > { %v444_v27 = vor.u32 %v4287_v24, %v4185_v2  ;;  %v803_v40 = vshrl.u32 %v799_v30, 16  ;;  %v813_v22 = vadd.s32 %v811_v8, %v809_v57  ;;  %v762_v11 = vsel %vm756_vm14, %v759_v47, %v761_v60 }
  0xc6   : > { %v669_v23 = vshll.u32 %v4308_v58, 30  ;;  %v783_v5 = vshrl.u32 %v778_v29, 16  ;;  %v792_v63 = vadd.s32 %v791_v4, %v781_v1  ;;  %v805_v25 = vshrl.u32 %v800_v31, 16 }
  0xc7   : > { %v814_v28 = vadd.s32 %v813_v22, %v803_v40  ;;  %v431_v26 = vshrl.u32 %v3961_v9, %v4175_v61  ;;  %v434_v62 = vshrl.u32 %v3962_v16, %v4175_v61  ;;  %v812_v2 = vadd.s32 %v808_v44, %v804_v41 }
  0xc8   : > { %v670_v20 = vsub.s32 %v666_v3, %v669_v23  ;;  %v793_v48 = vadd.s32 %v792_v63, %v783_v5  ;;  %v437_v24 = vshrl.u32 %v3959_v56, %v4175_v61  ;;  %v430_v55 = vshll.u32 %v3960_v7, %v4144_v43 }
  0xc9   : > { %v815_v30 = vadd.s32 %v814_v28, %v805_v25  ;;  %v433_v47 = vshll.u32 %v3961_v9, %v4144_v43  ;;  %v436_v29 = vshll.u32 %v3962_v16, %v4144_v43  ;;  %vm448_vm6 = vcmp.lt.s32.totalorder %v4150_v46, 4 }
  0xca   : > { %vm671_vm4 = vcmp.lt.s32.totalorder %v670_v20, 0  ;;  %v672_v31 = vsub.s32 0, %v670_v20  ;;  %vm818_vm5 = vc.u32 %v793_v48, %v812_v2  ;;  %v4329_v34 = vor.u32 %v431_v26, %v430_v55 }
  0xcb   : > { %v819_v33 = vadd.s32 1, %v815_v30  ;;  %v4331_v39 = vor.u32 %v434_v62, %v433_v47  ;;  %v438_v15 = vor.u32 %v437_v24, %v436_v29  ;;  %v816_v37 = vmul.u32 %v4142_v42, %v762_v11 }
  0xcc   : > { %v673_v35 = vsel %vm671_vm4, %v672_v31, %v670_v20  ;;  %v421_v49 = vor.u32 8388608, %v4148_v45  ;;  %v454_v3 = vsel %vm448_vm6, %v441_v17, 920167782  ;;  %v458_v43 = vsel %vm448_vm6, %v444_v27, 1326507024 }
  0xcd   : > { %v674_v10 = vclz %v673_v35  ;;  %v820_v38 = vsel %vm818_vm5, %v819_v33, %v815_v30  ;;  %vm445_vm7 = vcmp.lt.s32.totalorder %v4150_v46, 1  ;;  %vm446_vm8 = vcmp.lt.s32.totalorder %v4150_v46, 2 }
  0xce   : > { %v821_v59 = vadd.s32 %v820_v38, %v816_v37  ;;  %vm447_vm9 = vcmp.lt.s32.totalorder %v4150_v46, 3  ;;  %v453_v42 = vsel %vm445_vm7, %v4329_v34, %v4331_v39  ;;  %v457_v45 = vsel %vm445_vm7, %v4331_v39, %v438_v15 }
  0xcf   : > { %v3407_v41 = vadd.s32 4294967294, %v674_v10  ;;  %v455_v51 = vsel %vm447_vm9, %v438_v15, %v454_v3  ;;  %v459_v32 = vsel %vm447_vm9, %v441_v17, %v458_v43  ;;  %v4354_v52 = vshll.u32 %v421_v49, 8 }
  0xd0   : > { %v822_v44 = vadd.s32 536870912, %v821_v59  ;;  %v460_v60 = vsel %vm446_vm8, %v457_v45, %v459_v32  ;;  %v662_v54 = vadd.s32 %v4277_v6, %v4281_v21  ;;  %v456_v27 = vsel %vm446_vm8, %v453_v42, %v455_v51 }
  0xd1   : > { %vm3408_vm10 = vcmp.lt.s32.totalorder %v3407_v41, 0  ;;  %v464_v40 = vand.u32 65535, %v460_v60  ;;  %v462_v22 = vand.u32 65535, %v4354_v52  ;;  %v463_v23 = vshrl.u32 %v4354_v52, 16 }
  0xd2   : > { %v677_v57 = vsel %vm3408_vm10, 0, %v3407_v41  ;;  %v4360_v1 = vshrl.u32 %v822_v44, 30  ;;  %v465_v11 = vshrl.u32 %v460_v60, 16  ;;  %v486_v24 = vand.u32 65535, %v456_v27 }
  0xd3   : > { %v678_v4 = vsub.s32 32, %v677_v57  ;;  %v682_v8 = vsub.s32 4294967266, %v677_v57  ;;  %v679_v5 = vshll.u32 %v670_v20, %v677_v57  ;;  %v4367_v28 = vmul.u32 %v464_v40, %v463_v23 }
  0xd4   : > { %v824_v17 = vshll.u32 %v4360_v1, 30  ;;  %v467_v21 = vmul.u32 %v465_v11, %v462_v22  ;;  %vm570_vm11 = vcmp.lt.s32.totalorder %v4118_v13, 0  ;;  %v487_v47 = vshrl.u32 %v456_v27, 16 }
  0xd5   : > { %v680_v63 = vshrl.u32 %v662_v54, %v678_v4  ;;  %v683_v25 = vadd.s32 127, %v682_v8  ;;  %vm4372_vm13 = vcmp.le.f32.partialorder %v568_v18, 0.7853982  ;;  %v817_v31 = vadd.s32 %v812_v2, %v793_v48 }
  0xd6   : > { %v825_v6 = vsub.s32 %v821_v59, %v824_v17  ;;  %v470_v55 = vshll.u32 %v467_v21, 16  ;;  %v466_v33 = vmul.u32 %v464_v40, %v462_v22  ;;  %v469_v49 = vmul.u32 %v465_v11, %v463_v23 }
  0xd7   : > { %v681_v26 = vor.u32 %v680_v63, %v679_v5  ;;  %v684_v62 = vshll.u32 %v683_v25, 23  ;;  %v472_v3 = vshll.u32 %v4367_v28, 16  ;;  %v450_v59 = vsel %vm448_vm6, %v438_v15, 2102212464 }
  0xd8   : > { %vm826_vm12 = vcmp.lt.s32.totalorder %v825_v6, 0  ;;  %v827_v30 = vsub.s32 0, %v825_v6  ;;  %vm474_vm14 = vc.u32 %v466_v33, %v470_v55  ;;  %v476_v38 = vadd.s32 %v470_v55, %v466_v33 }
  0xd9   : > { %v685_v20 = vor.u32 4788187, %v684_v62  ;;  %v688_v35 = vcvt.s32.f32 %v681_v26  ;;  %v475_v18 = vsel %vm474_vm14, 1, %v3956_v0  ;;  %v489_v41 = vmul.u32 %v487_v47, %v462_v22 }
  0xda   : > { %v828_v37 = vsel %vm826_vm12, %v827_v30, %v825_v6  ;;  %v490_v42 = vmul.u32 %v486_v24, %v463_v23  ;;  %v477_v48 = vadd.s32 %v475_v18, %v469_v49  ;;  %vm478_vm15 = vc.u32 %v476_v38, %v472_v3 }
  0xdb   : > { %v686_v43 = vand.u32 2147483647, %v685_v20  ;;  %v829_v10 = vclz %v828_v37  ;;  %v471_v2 = vshrl.u32 %v467_v21, 16  ;;  %v479_v51 = vsel %vm478_vm15, 1, %v3956_v0 }
  0xdc   : > { %v488_v32 = vmul.u32 %v486_v24, %v462_v22  ;;  %v492_v60 = vshll.u32 %v489_v41, 16  ;;  %v481_v57 = vadd.s32 %v479_v51, %v477_v48  ;;  %v491_v4 = vmul.u32 %v487_v47, %v463_v23 }
  0xdd   : > { %v689_v45 = vmul.f32 %v688_v35, %v686_v43  ;;  %v3410_v44 = vadd.s32 4294967294, %v829_v10  ;;  %v494_v27 = vshll.u32 %v490_v42, 16  ;;  %v429_v24 = vshrl.u32 %v3960_v7, %v4175_v61 }
  0xde   : > { %vm496_vm1 = vc.u32 %v488_v32, %v492_v60  ;;  %v498_v15 = vadd.s32 %v492_v60, %v488_v32  ;;  %v482_v22 = vadd.s32 %v481_v57, %v471_v2  ;;  %v473_v30 = vshrl.u32 %v4367_v28, 16 }
  0xdf   : > { %v690_v54 = vxor.u32 2147483648, %v689_v45  ;;  %vm3411_vm0 = vcmp.lt.s32.totalorder %v3410_v44, 0  ;;  %v497_v25 = vsel %vm496_vm1, 1, %v3956_v0  ;;  %v449_v35 = vsel %vm445_vm7, %v429_v24, %v4329_v34 }
  0xe0   : > { %v832_v8 = vsel %vm3411_vm0, 0, %v3410_v44  ;;  %vm500_vm2 = vc.u32 %v498_v15, %v494_v27  ;;  %v499_v62 = vadd.s32 %v497_v25, %v491_v4  ;;  %v493_v37 = vshrl.u32 %v489_v41, 16 }
  0xe1   : > { %v691_v40 = vsel %vm570_vm11, %v690_v54, %v689_v45  ;;  %v833_v17 = vsub.s32 32, %v832_v8  ;;  %v834_v11 = vshll.u32 %v825_v6, %v832_v8  ;;  %v837_v5 = vsub.s32 4294967266, %v832_v8 }
  0xe2   : > { %v694_v63 = vsel %vm4372_vm13, %v4118_v13, %v691_v40  ;;  %v501_v6 = vsel %vm500_vm2, 1, %v3956_v0  ;;  %v4397_v28 = vadd.s32 %v482_v22, %v473_v30  ;;  %v495_v10 = vshrl.u32 %v490_v42, 16 }
  0xe3   : > { %v696_v21 = vmul.f32 %v694_v63, %v694_v63  ;;  %v835_v23 = vshrl.u32 %v817_v31, %v833_v17  ;;  %v838_v26 = vadd.s32 127, %v837_v5  ;;  %v451_v31 = vsel %vm447_vm9, %v4331_v39, %v450_v59 }
  0xe4   : > { %v503_v49 = vadd.s32 %v501_v6, %v499_v62  ;;  %v4399_v48 = vadd.s32 %v498_v15, %v494_v27  ;;  %v452_v34 = vsel %vm446_vm8, %v449_v35, %v451_v31  ;;  %v692_v32 = vsub.s32 4, %v4308_v58 }
  0xe5   : > { %v697_v55 = vmul.f32 -0.001358992, %v696_v21  ;;  %v704_v47 = vmul.f32 -0.00019511016, %v696_v21  ;;  %v836_v20 = vor.u32 %v835_v23, %v834_v11  ;;  %v839_v33 = vshll.u32 %v838_v26, 23 }
  0xe6   : > { %v504_v38 = vadd.s32 %v503_v49, %v493_v37  ;;  %vm508_vm3 = vc.u32 %v4397_v28, %v4399_v48  ;;  %v506_v54 = vmul.u32 %v4354_v52, %v452_v34  ;;  %vm725_vm4 = vcmp.lt.s32.totalorder %v4120_v14, 0 }
  0xe7   : > { %v698_v3 = vadd.f32 0.041655596, %v697_v55  ;;  %v705_v61 = vadd.f32 0.008332121, %v704_v47  ;;  %v840_v43 = vor.u32 4788187, %v839_v33  ;;  %v843_v44 = vcvt.s32.f32 %v836_v20 }
  0xe8   : > { %v505_v51 = vadd.s32 %v504_v38, %v495_v10  ;;  %vm4410_vm5 = vcmp.le.f32.partialorder %v723_v19, 0.7853982  ;;  %v693_v52 = vsel %vm570_vm11, %v692_v32, %v4308_v58  ;;  %v847_v19 = vsub.s32 4, %v4360_v1 }
  0xe9   : > { %v706_v18 = vmul.f32 %v705_v61, %v696_v21  ;;  %v841_v45 = vand.u32 2147483647, %v840_v43  ;;  %v699_v2 = vmul.f32 %v698_v3, %v696_v21  ;;  %v4425_v23 = vsel %vm4372_vm13, 0, %v693_v52 }
  0xea   : > { %v509_v41 = vadd.s32 1, %v505_v51  ;;  %v1176_v29 = vand.u32 3, %v4425_v23  ;;  %vm711_vm10 = vweird.f32 %v4118_v13  ;;  %v507_v32 = vadd.s32 %v4399_v48, %v4397_v28  ;;  %v4542_v13 = vld [vmem:[%s5189_s10 + $0x48] sm:$0xff] }
  0xeb   : > { %v707_v39 = vadd.f32 -0.16666654, %v706_v18  ;;  %v844_v59 = vmul.f32 %v843_v44, %v841_v45  ;;  %v700_v57 = vadd.f32 -0.4999988, %v699_v2  ;;  %vm866_vm15 = vweird.f32 %v4120_v14 }
  0xec   : > { %v510_v4 = vsel %vm508_vm3, %v509_v41, %v505_v51  ;;  %vm1178_vm7 = vcmp.eq.s32.totalorder %v1176_v29, 0  ;;  %vm1181_vm8 = vcmp.eq.s32.totalorder %v1176_v29, 2  ;;  %vm1177_vm9 = vcmp.lt.s32.totalorder %v1176_v29, 2 }
  0xed   : > { %v708_v42 = vmul.f32 %v707_v39, %v696_v21  ;;  %v845_v60 = vxor.u32 2147483648, %v844_v59  ;;  %v511_v27 = vadd.s32 %v510_v4, %v506_v54  ;;  %v701_v5 = vmul.f32 %v700_v57, %v696_v21 }
  0xee   : > { %v848_v21 = vsel %vm725_vm4, %v847_v19, %v4360_v1  ;;  %vm415_vm0 = vcmp.lt.s32.totalorder %v4116_v12, 0  ;;  %vm414_vm1 = vcmp.le.f32.partialorder %v413_v36, 0.7853982 }
  0xef   : > { %v846_v8 = vsel %vm725_vm4, %v845_v60, %v844_v59  ;;  %v709_v15 = vadd.f32 1.0, %v708_v42  ;;  %v512_v11 = vadd.s32 536870912, %v511_v27  ;;  %v4431_v6 = vadd.f32 1.0, %v701_v5 }
  0xf0   : > { %v849_v40 = vsel %vm4410_vm5, %v4120_v14, %v846_v8  ;;  %v850_v37 = vsel %vm4410_vm5, 0, %v848_v21 }
  0xf1   : > { %v851_v17 = vmul.f32 %v849_v40, %v849_v40  ;;  %v4427_v26 = vmul.f32 %v709_v15, %v694_v63  ;;  %v4429_v62 = vshrl.u32 %v512_v11, 30  ;;  %v719_v31 = vxor.u32 2147483648, %v4431_v6  ;;  %v4472_v11 = vld [vmem:[%s5189_s10 + $0x40] sm:$0xff] }
  0xf2   : > { %v1330_v18 = vand.u32 3, %v850_v37  ;;  %1417 = vperm.xlu1 %3809, %v4472_v11  }
  0xf3   : > { %v852_v22 = vmul.f32 -0.001358992, %v851_v17  ;;  %v859_v25 = vmul.f32 -0.00019511016, %v851_v17  ;;  %v514_v58 = vshll.u32 %v4429_v62, 30  ;;  %v716_v20 = vxor.u32 2147483648, %v4427_v26 }
  0xf4   : > { %v1183_v44 = vsel %vm1181_vm8, %v719_v31, %v4427_v26  ;;  %vm1331_vm11 = vcmp.lt.s32.totalorder %v1330_v18, 2  ;;  %vm1332_vm12 = vcmp.eq.s32.totalorder %v1330_v18, 0  ;;  %vm1335_vm14 = vcmp.eq.s32.totalorder %v1330_v18, 2 }
  0xf5   : > { %v853_v24 = vadd.f32 0.041655596, %v852_v22  ;;  %v860_v30 = vadd.f32 0.008332121, %v859_v25  ;;  %v515_v63 = vsub.s32 %v511_v27, %v514_v58  ;;  %v1180_v1 = vsel %vm1178_vm7, %v4431_v6, %v716_v20  ;;  %v4482_v58 = vld [vmem:[%s5189_s10 + $0x38] sm:$0xff] }
  0xf6   : > { %v1184_v51 = vsel %vm1177_vm9, %v1180_v1, %v1183_v44 }
  0xf7   : > { %v854_v55 = vmul.f32 %v853_v24, %v851_v17  ;;  %v861_v47 = vmul.f32 %v860_v30, %v851_v17  ;;  %vm516_vm6 = vcmp.lt.s32.totalorder %v515_v63, 0  ;;  %v517_v49 = vsub.s32 0, %v515_v63 }
  0xf8   : > { %v1185_v41 = vsel %vm711_vm10, nan, %v1184_v51  ;;  %v537_v30 = vsub.s32 4, %v4429_v62 }
  0xf9   : > { %v855_v33 = vadd.f32 -0.4999988, %v854_v55  ;;  %v862_v35 = vadd.f32 -0.16666654, %v861_v47  ;;  %v518_v43 = vsel %vm516_vm6, %v517_v49, %v515_v63 }
  0xfa   : > { %v519_v45 = vclz %v518_v43  ;;  %1412 = vperm.xlu1 %3809, %v4482_v58   ;;  %v538_v47 = vsel %vm415_vm0, %v537_v30, %v4429_v62  ;;  %v3673_v30 = vld [vmem:[%s5181_s2 + $0x10] sm:$0xff] }
  0xfb   : > { %v856_v3 = vmul.f32 %v855_v33, %v851_v17  ;;  %v863_v61 = vmul.f32 %v862_v35, %v851_v17  ;;  %v867_v33 = vadd.s32 3, %v850_v37  ;;  %v540_v49 = vsel %vm414_vm1, 0, %v538_v47  ;;  %v3676_v47 = vld [vmem:[%s5181_s2 + $0x28] sm:$0xff] }
  0xfc   : > { %v3404_v39 = vadd.s32 4294967294, %v519_v45  ;;  %v557_v44 = vadd.s32 3, %v540_v49 }
  0xfd   : > { %v4445_v10 = vadd.f32 1.0, %v856_v3  ;;  %v864_v38 = vadd.f32 1.0, %v863_v61  ;;  %v4490_v3 = vld [vmem:[%s5189_s10 + $0x10] sm:$0xff]  ;;  %v868_v43 = vand.u32 3, %v867_v33 }
  0xfe   : > { %vm3405_vm13 = vcmp.lt.s32.totalorder %v3404_v39, 0 }
  0xff   : > { %v4450_v2 = vmul.f32 %v864_v38, %v849_v40  ;;  %v874_v34 = vxor.u32 2147483648, %v4445_v10  ;;  %v522_v42 = vsel %vm3405_vm13, 0, %v3404_v39  ;;  %v712_v38 = vadd.s32 3, %v4425_v23 }
 0x100   : > { %v523_v57 = vsub.s32 32, %v522_v42  ;;  %v527_v4 = vsub.s32 4294967266, %v522_v42  ;;  %v524_v27 = vshll.u32 %v515_v63, %v522_v42  ;;  %vm870_vm2 = vcmp.eq.s32.totalorder %v868_v43, 0 }
 0x101   : > { %v871_v59 = vxor.u32 2147483648, %v4450_v2  ;;  %v1337_v54 = vsel %vm1335_vm14, %v874_v34, %v4450_v2  ;;  %v713_v51 = vand.u32 3, %v712_v38  ;;  %vm873_vm3 = vcmp.eq.s32.totalorder %v868_v43, 2 }
 0x102   : > { %v525_v15 = vshrl.u32 %v507_v32, %v523_v57  ;;  %v528_v40 = vadd.s32 127, %v527_v4  ;;  %1387 = vperm.xlu1 %3809, %v4490_v3   ;;  %vm869_vm4 = vcmp.lt.s32.totalorder %v868_v43, 2  ;;  %v875_v23 = vsel %vm873_vm3, %v874_v34, %v4450_v2 }
 0x103   : > { %v1334_v60 = vsel %vm1332_vm12, %v4445_v10, %v871_v59  ;;  %v872_v39 = vsel %vm870_vm2, %v4445_v10, %v871_v59  ;;  %vm714_vm5 = vcmp.lt.s32.totalorder %v713_v51, 2  ;;  %v4506_v59 = vld [vmem:[%s5189_s10 + $0x68] sm:$0xff]  ;;  %vm715_vm9 = vcmp.eq.s32.totalorder %v713_v51, 0 }
 0x104   : > { %v1338_v46 = vsel %vm1331_vm11, %v1334_v60, %v1337_v54  ;;  %v526_v28 = vor.u32 %v525_v15, %v524_v27  ;;  %v529_v48 = vshll.u32 %v528_v40, 23  ;;  %v558_v60 = vand.u32 3, %v557_v44  ;;  %1442 = vperm.xlu2 %3810, %v4506_v59  }
 0x105   : > { %v1339_v8 = vsel %vm866_vm15, nan, %v1338_v46  ;;  %v876_v4 = vsel %vm869_vm4, %v872_v39, %v875_v23  ;;  %v4501_v46 = vld [vmem:[%s5189_s10 + $0x8] sm:$0xff]  ;;  %v717_v2 = vsel %vm715_vm9, %v4431_v6, %v716_v20  ;;  %vm718_vm12 = vcmp.eq.s32.totalorder %v713_v51, 2  ;;  %v4536_v6 = vld [vmem:[%s5189_s10 + $0x50] sm:$0xff] }
 0x106   : > { %v4466_v52 = vpack.c.bf16 %v1339_v8, %v1185_v41  ;;  %v530_v17 = vor.u32 4788187, %v529_v48  ;;  %v533_v19 = vcvt.s32.f32 %v526_v28  ;;  %v1022_v41 = vand.u32 3, %v540_v49 }
 0x107   : > { %vm559_vm11 = vcmp.lt.s32.totalorder %v558_v60, 2  ;;  %v877_v34 = vsel %vm866_vm15, nan, %v876_v4  ;;  %vm560_vm13 = vcmp.eq.s32.totalorder %v558_v60, 0  ;;  %vm563_vm14 = vcmp.eq.s32.totalorder %v558_v60, 2  ;;  %v4600_v4 = vld [vmem:[%s5189_s10 + $0x78] sm:$0xff] }
 0x108   : > { %1525 = vmatpush.bf16.msra.mxu0 %v4466_v52  ;;  %v531_v5 = vand.u32 2147483647, %v530_v17  ;;  %vm1023_vm6 = vcmp.lt.s32.totalorder %v1022_v41, 2  ;;  %vm1024_vm7 = vcmp.eq.s32.totalorder %v1022_v41, 0  ;;  %vm1027_vm8 = vcmp.eq.s32.totalorder %v1022_v41, 2 }
 0x109   : > { %v720_v8 = vsel %vm718_vm12, %v719_v31, %v4427_v26  ;;  %vm1495_vm15 = vcmask 392192   ;;  %v3672_v31 = vld [vmem:[%s5181_s2 + $0x8] sm:$0xff] }
 0x10a   : > { %v534_v22 = vmul.f32 %v533_v19, %v531_v5  ;;  %1382 = vperm.xlu1 %3809, %v4501_v46   ;;  %v721_v17 = vsel %vm714_vm5, %v717_v2, %v720_v8  ;;  %v4612_v2 = vld [vmem:[%s5189_s10 + $0x60] sm:$0xff] }
 0x10c   : > { %v535_v25 = vxor.u32 2147483648, %v534_v22  ;;  %1427 = vperm.xlu2 %3810, %v4536_v6  }
 0x10e   : > { %v536_v24 = vsel %vm415_vm0, %v535_v25, %v534_v22  ;;  %vm556_vm0 = vweird.f32 %v4116_v12  ;;  %v722_v22 = vsel %vm711_vm10, nan, %v721_v17  ;;  %v4552_v25 = vld [vmem:[%s5189_s10 + $0x20] sm:$0xff] }
 0x10f   : > { %v539_v21 = vsel %vm414_vm1, %v4116_v12, %v536_v24  ;;  %v3671_v12 = vld [vmem:[%s5181_s2] sm:$0xff]  ;;  %v4558_v24 = vld [vmem:[%s5189_s10 + $0x18] sm:$0xff] }
 0x110   : > { %v541_v55 = vmul.f32 %v539_v21, %v539_v21 }
 0x112   : > { %v542_v29 = vmul.f32 -0.001358992, %v541_v55  ;;  %v549_v63 = vmul.f32 -0.00019511016, %v541_v55 }
 0x114   : > { %v543_v35 = vadd.f32 0.041655596, %v542_v29  ;;  %v550_v36 = vadd.f32 0.008332121, %v549_v63  ;;  %1422 = vperm.xlu2 %3810, %v4542_v13   ;;  %v3677_v29 = vld [vmem:[%s5181_s2 + $0x30] sm:$0xff]  ;;  %v3678_v63 = vld [vmem:[%s5181_s2 + $0x38] sm:$0xff] }
 0x116   : > { %v544_v61 = vmul.f32 %v543_v35, %v541_v55  ;;  %v551_v1 = vmul.f32 %v550_v36, %v541_v55 }
 0x118   : > { %v545_v18 = vadd.f32 -0.4999988, %v544_v61  ;;  %v552_v45 = vadd.f32 -0.16666654, %v551_v1 }
 0x11a   : > { %v546_v62 = vmul.f32 %v545_v18, %v541_v55  ;;  %v553_v37 = vmul.f32 %v552_v45, %v541_v55  ;;  %v3675_v55 = vld [vmem:[%s5181_s2 + $0x20] sm:$0xff] }
 0x11c   : > { %v547_v32 = vadd.f32 1.0, %v546_v62  ;;  %v554_v42 = vadd.f32 1.0, %v553_v37  ;;  %1397 = vperm.xlu2 %3810, %v4552_v25   ;;  %v1453_v37 = vpop.permute.xlu1 %1452 }
 0x11e   : > { %v555_v54 = vmul.f32 %v554_v42, %v539_v21  ;;  %v564_v57 = vxor.u32 2147483648, %v547_v32  ;;  %v3674_v21 = vld [vmem:[%s5181_s2 + $0x18] sm:$0xff]  ;;  %v1448_v42 = vpop.permute.xlu0 %1447 }
 0x120   : > { %v561_v10 = vxor.u32 2147483648, %v555_v54  ;;  %v1029_v15 = vsel %vm1027_vm8, %v564_v57, %v555_v54  ;;  %v565_v28 = vsel %vm563_vm14, %v564_v57, %v555_v54  ;;  %v3963_v57 = vmov 1  }
 0x121   : > { %3812 = vset.pattern.permute.xlu0 %v3963_v57  ;;  %3813 = vset.pattern.permute.xlu1 %v3963_v57 }
 0x122   : > { %v1026_v27 = vsel %vm1024_vm7, %v547_v32, %v561_v10  ;;  %v562_v40 = vsel %vm560_vm13, %v547_v32, %v561_v10  ;;  %1670 = vperm.xlu0 %3812, %v4600_v4   ;;  %v4606_v10 = vld [vmem:[%s5189_s10 + $0x70] sm:$0xff]  ;;  %1658 = vperm.xlu1 %3813, %v4612_v2  }
 0x123   : > { %v1030_v20 = vsel %vm1023_vm6, %v1026_v27, %v1029_v15  ;;  %v566_v48 = vsel %vm559_vm11, %v562_v40, %v565_v28 }
 0x124   : > { %v1031_v5 = vsel %vm556_vm0, nan, %v1030_v20  ;;  %v567_v19 = vsel %vm556_vm0, nan, %v566_v48  ;;  %1392 = vperm.xlu2 %3810, %v4558_v24   ;;  %v1438_v41 = vpop.permute.xlu1 %1437 }
 0x125   : > { %v4521_v14 = vpack.c.bf16 %v1031_v5, %v877_v34  ;;  %v4526_v26 = vpack.c.bf16 %v722_v22, %v567_v19 }
 0x126   : > { %v1433_v34 = vpop.permute.xlu0 %1432 }
 0x127   : > { %1526 = vmatpush.bf16.msra.mxu0 %v4521_v14 }
 0x12a   : > { %1642 = vperm.xlu0 %3812, %v4472_v11   ;;  %1650 = vperm.xlu1 %3813, %v4536_v6  }
 0x12b   : > { %1527 = vmatpush.bf16.msra.mxu0 %v4526_v26 }
 0x12c   : > { %3811 = vset.pattern.permute.xlu2 %v3963_v57 }
 0x12d   : > { %1666 = vperm.xlu2 %3811, %v4606_v10  }
 0x12e   : > { %3453 = vmatmul.msk.bf16.vlgmr.msra.gmra.mxu0 %vm1495_vm15, %v3671_v12 }
 0x132   : > { %1638 = vperm.xlu0 %3812, %v4482_v58   ;;  %1646 = vperm.xlu1 %3813, %v4542_v13  }
 0x135   : > { %1662 = vperm.xlu2 %3811, %v4506_v59  }
 0x13a   : > { %1618 = vperm.xlu0 %3812, %v4490_v3   ;;  %1626 = vperm.xlu1 %3813, %v4552_v25  }
 0x13e   : > { %3454 = vmatmul.msk.bf16.gmra.mxu0 %vm1495_vm15, %v3672_v31  ;;  %v1408_v31 = vpop.permute.xlu0 %1407 }
 0x142   : > { %1614 = vperm.xlu0 %3812, %v4501_v46   ;;  %1622 = vperm.xlu1 %3813, %v4558_v24  }
 0x14e   : > { %3455 = vmatmul.msk.bf16.gmra.mxu0 %vm1495_vm15, %v3673_v30 }
 0x15e   : > { %3456 = vmatmul.msk.bf16.gmra.mxu0 %vm1495_vm15, %v3674_v21  ;;  %v1443_v39 = vpop.permute.xlu2 %1442 }
 0x164   : > { %v1418_v23 = vpop.permute.xlu1 %1417 }
 0x166   : > { %v1428_v60 = vpop.permute.xlu2 %1427 }
 0x16c   : > { %v1413_v20 = vpop.permute.xlu1 %1412 }
 0x16e   : > { %3457 = vmatmul.msk.bf16.gmra.mxu0 %vm1495_vm15, %v3675_v55  ;;  %v1423_v8 = vpop.permute.xlu2 %1422 }
 0x176   : > { %v1398_v55 = vpop.permute.xlu2 %1397 }
 0x17e   : > { %3458 = vmatmul.msk.bf16.gmra.mxu0 %vm1495_vm15, %v3676_v47 }
 0x18e   : > { %3459 = vmatmul.msk.bf16.gmra.mxu0 %vm1495_vm15, %v3677_v29 }
 0x19e   : > { %3460 = vmatmul.msk.bf16.gmra.mxu0 %vm1495_vm15, %v3678_v63 }
 0x1ab   : > { %v4585_v33 = vpop.f32.mrf.mxu0 }
 0x1b3   : > { %v4587_v35 = vpop.f32.mrf.mxu0 }
 0x1bb   : > { %v4589_v36 = vpop.f32.mrf.mxu0 }
 0x1c3   : > { %v4591_v49 = vpop.f32.mrf.mxu0 }
 0x1cb   : > { %v4593_v61 = vpop.f32.mrf.mxu0 }
 0x1d3   : > { %v4595_v1 = vpop.f32.mrf.mxu0 }
 0x1db   : > { %v1544_v43 = vpop.f32.mrf.mxu0 }
 0x1e3   : > { %v1546_v38 = vpop.f32.mrf.mxu0 }
 0x1eb   : > { %v1549_v18 = vpop.f32.mrf.mxu0 }
 0x1f3   : > { %v1551_v45 = vpop.f32.mrf.mxu0 }
 0x1f4   : > { %v1552_v47 = vadd.f32 %v1551_v45, %v1423_v8 }
 0x1f6   : > { %v1578_v45 = vmax.f32 %v1552_v47, 0.0  ;;  %v3684_v47 = vld [vmem:[%s5182_s3 + $0x28] sm:$0xff] }
 0x1fb   : > { %v1554_v44 = vpop.f32.mrf.mxu0 }
 0x1fc   : > { %v1555_v30 = vadd.f32 %v1554_v44, %v1428_v60  ;;  %v1388_v44 = vpop.permute.xlu1 %1387  ;;  %v1403_v60 = vpop.permute.xlu0 %1402 }
 0x203   : > { %v1556_v62 = vpop.f32.mrf.mxu0 }
 0x204   : > { %v1557_v19 = vadd.f32 %v1556_v62, %v1433_v34  ;;  %v1550_v62 = vadd.f32 %v1549_v18, %v1418_v23  ;;  %v4631_v18 = vld [vmem:[%s5189_s10 + $0x30] sm:$0xff] }
 0x206   : > { %v1580_v29 = vmax.f32 %v1557_v19, 0.0 }
 0x20b   : > { %v1559_v51 = vpop.f32.mrf.mxu0 }
 0x20c   : > { %v1560_v48 = vadd.f32 %v1559_v51, %v1438_v41  ;;  %v1579_v51 = vmax.f32 %v1555_v30, 0.0  ;;  %v3685_v30 = vld [vmem:[%s5182_s3 + $0x30] sm:$0xff] }
 0x20e   : > { %v1581_v21 = vmax.f32 %v1560_v48, 0.0  ;;  %v1590_v41 = vpack.c.bf16 %v1580_v29, %v1579_v51 }
 0x213   : > { %v1561_v32 = vpop.f32.mrf.mxu0 }
 0x214   : > { %v1562_v40 = vadd.f32 %v1561_v32, %v1443_v39  ;;  %v1547_v39 = vadd.f32 %v1546_v38, %v1413_v20  ;;  %v1545_v32 = vadd.f32 %v1544_v43, %v1408_v31  ;;  %v1393_v38 = vpop.permute.xlu2 %1392  ;;  %v1540_v43 = vadd.f32 %v4593_v61, %v1398_v55  ;;  %v4643_v61 = vld [vmem:[%s5189_s10 + $0x28] sm:$0xff]  ;;  %v4651_v31 = vld [vmem:[%s5189_s10] sm:$0xff]  ;;  %v3686_v55 = vld [vmem:[%s5182_s3 + $0x38] sm:$0xff] }
 0x216   : > { %v1582_v22 = vmax.f32 %v1562_v40, 0.0  ;;  %v1576_v57 = vmax.f32 %v1547_v39, 0.0  ;;  %v1575_v23 = vmax.f32 %v1545_v32, 0.0  ;;  %v1535_v40 = vadd.f32 %v4589_v36, %v1388_v44 }
 0x218   : > { %v1591_v63 = vpack.c.bf16 %v1582_v22, %v1581_v21  ;;  %v1571_v36 = vmax.f32 %v1535_v40, 0.0  ;;  %v3680_v21 = vld [vmem:[%s5182_s3 + $0x8] sm:$0xff] }
 0x21b   : > { %v1564_v54 = vpop.f32.mrf.mxu0 }
 0x21c   : > { %v1565_v27 = vadd.f32 %v1564_v54, %v1448_v42  ;;  %v1577_v42 = vmax.f32 %v1550_v62, 0.0  ;;  %v1542_v54 = vadd.f32 %v4595_v1, %v1403_v60  ;;  %v1537_v1 = vadd.f32 %v4591_v49, %v1393_v38  ;;  %v1378_v49 = vpop.permute.xlu0 %1377  ;;  %v1667_v39 = vpop.permute.xlu2 %1666 }
 0x21e   : > { %v1583_v17 = vmax.f32 %v1565_v27, 0.0  ;;  %v1589_v34 = vpack.c.bf16 %v1578_v45, %v1577_v42  ;;  %v1574_v8 = vmax.f32 %v1542_v54, 0.0  ;;  %v1588_v27 = vpack.c.bf16 %v1576_v57, %v1575_v23 }
 0x21f   : > { %v1572_v48 = vmax.f32 %v1537_v1, 0.0 }
 0x221   : > { %v1586_v19 = vpack.c.bf16 %v1572_v48, %v1571_v36 }
 0x223   : > { %v1566_v15 = vpop.f32.mrf.mxu0 }
 0x224   : > { %v1567_v28 = vadd.f32 %v1566_v15, %v1453_v37  ;;  %v4622_v37 = vld [vmem:[%s5189_s10 + $0x58] sm:$0xff]  ;;  %v1383_v15 = vpop.permute.xlu1 %1382  ;;  %v1663_v42 = vpop.permute.xlu2 %1662 }
 0x225   : > { %1654 = vperm.xlu2 %3811, %v4622_v37   ;;  %v1532_v20 = vadd.f32 %v4587_v35, %v1383_v15 }
 0x226   : > { %v1584_v5 = vmax.f32 %v1567_v28, 0.0  ;;  %v1573_v28 = vmax.f32 %v1540_v43, 0.0 }
 0x227   : > { %v1570_v35 = vmax.f32 %v1532_v20, 0.0 }
 0x228   : > { %v1592_v12 = vpack.c.bf16 %v1584_v5, %v1583_v17  ;;  %v1587_v17 = vpack.c.bf16 %v1574_v8, %v1573_v28  ;;  %v1530_v5 = vadd.f32 %v4585_v33, %v1378_v49  ;;  %v3679_v33 = vld [vmem:[%s5182_s3] sm:$0xff]  ;;  %v3964_v49 = vmov 2  }
 0x229   : > { %3814 = vset.pattern.permute.xlu1 %v3964_v49  ;;  %3816 = vset.pattern.permute.xlu0 %v3964_v49 }
 0x22a   : > { %1721 = vmatpush.bf16.msra.mxu1 %v1592_v12  ;;  %3727 = vmatpush.bf16.msra.mxu3 %v1592_v12  ;;  %v1569_v22 = vmax.f32 %v1530_v5, 0.0 }
 0x22b   : > { %1867 = vperm.xlu1 %3814, %v4606_v10   ;;  %1859 = vperm.xlu0 %3816, %v4612_v2  }
 0x22c   : > { %v1585_v12 = vpack.c.bf16 %v1570_v35, %v1569_v22  ;;  %v1659_v60 = vpop.permute.xlu1 %1658 }
 0x22d   : > { %1634 = vperm.xlu2 %3811, %v4631_v18  }
 0x22e   : > { %1722 = vmatpush.bf16.msra.mxu1 %v1591_v63  ;;  %3728 = vmatpush.bf16.msra.mxu3 %v1591_v63 }
 0x232   : > { %1723 = vmatpush.bf16.msra.mxu1 %v1590_v41  ;;  %3729 = vmatpush.bf16.msra.mxu3 %v1590_v41 }
 0x233   : > { %1863 = vperm.xlu1 %3814, %v4506_v59   ;;  %1847 = vperm.xlu0 %3816, %v4542_v13  }
 0x234   : > { %v1651_v36 = vpop.permute.xlu1 %1650 }
 0x235   : > { %1630 = vperm.xlu2 %3811, %v4643_v61  }
 0x236   : > { %1724 = vmatpush.bf16.msra.mxu1 %v1589_v34  ;;  %3730 = vmatpush.bf16.msra.mxu3 %v1589_v34  ;;  %v1671_v34 = vpop.permute.xlu0 %1670 }
 0x23a   : > { %1725 = vmatpush.bf16.msra.mxu1 %v1588_v27  ;;  %3731 = vmatpush.bf16.msra.mxu3 %v1588_v27 }
 0x23b   : > { %1855 = vperm.xlu1 %3814, %v4622_v37   ;;  %1827 = vperm.xlu0 %3816, %v4552_v25  }
 0x23d   : > { %1610 = vperm.xlu2 %3811, %v4651_v31  }
 0x23e   : > { %1726 = vmatpush.bf16.msra.mxu1 %v1587_v17  ;;  %3732 = vmatpush.bf16.msra.mxu3 %v1587_v17  ;;  %v1643_v35 = vpop.permute.xlu0 %1642 }
 0x242   : > { %1727 = vmatpush.bf16.msra.mxu1 %v1586_v19  ;;  %3733 = vmatpush.bf16.msra.mxu3 %v1586_v19 }
 0x243   : > { %1835 = vperm.xlu1 %3814, %v4631_v18   ;;  %1823 = vperm.xlu0 %3816, %v4558_v24  }
 0x245   : > { %3815 = vset.pattern.permute.xlu2 %v3964_v49 }
 0x246   : > { %1728 = vmatpush.bf16.msra.mxu1 %v1585_v12  ;;  %3734 = vmatpush.bf16.msra.mxu3 %v1585_v12  ;;  %v1647_v12 = vpop.permute.xlu1 %1646 }
 0x247   : > { %1871 = vperm.xlu2 %3815, %v4600_v4  }
 0x249   : > { %1729 = vmatmul.bf16.vlgmr.msra.gmra.mxu1 %v3679_v33  ;;  %1759 = vmatmul.bf16.vlgmr.msra.gmra.mxu3 %v3685_v30  ;;  %v1639_v30 = vpop.permute.xlu0 %1638 }
 0x24a   : > { %2394 = vmatpush.bf16.msrb.mxu1 %v4466_v52  ;;  %v3681_v52 = vld [vmem:[%s5182_s3 + $0x10] sm:$0xff] }
 0x24b   : > { %1831 = vperm.xlu1 %3814, %v4643_v61  }
 0x24e   : > { %2395 = vmatpush.bf16.msrb.mxu1 %v4521_v14  ;;  %v3682_v14 = vld [vmem:[%s5182_s3 + $0x18] sm:$0xff] }
 0x24f   : > { %1851 = vperm.xlu2 %3815, %v4536_v6  }
 0x252   : > { %2396 = vmatpush.bf16.msrb.mxu1 %v4526_v26  ;;  %v3683_v26 = vld [vmem:[%s5182_s3 + $0x20] sm:$0xff] }
 0x253   : > { %1811 = vperm.xlu1 %3814, %v4651_v31  }
 0x257   : > { %1843 = vperm.xlu2 %3815, %v4472_v11  }
 0x259   : > { %1734 = vmatmul.bf16.gmra.mxu1 %v3680_v21  ;;  %1764 = vmatmul.bf16.gmra.mxu3 %v3686_v55 }
 0x25f   : > { %1839 = vperm.xlu2 %3815, %v4482_v58  }
 0x267   : > { %1819 = vperm.xlu2 %3815, %v4490_v3  }
 0x269   : > { %1739 = vmatmul.bf16.gmra.mxu1 %v3681_v52  ;;  %v1627_v52 = vpop.permute.xlu1 %1626 }
 0x26f   : > { %1815 = vperm.xlu2 %3815, %v4501_v46  }
 0x279   : > { %1744 = vmatmul.bf16.gmra.mxu1 %v3682_v14 }
 0x27f   : > { %v1655_v22 = vpop.permute.xlu2 %1654 }
 0x287   : > { %v1635_v21 = vpop.permute.xlu2 %1634 }
 0x289   : > { %1749 = vmatmul.bf16.gmra.mxu1 %v3683_v26 }
 0x299   : > { %1754 = vmatmul.bf16.gmra.mxu1 %v3684_v47 }
 0x2c6   : > { %v4681_v29 = vpop.f32.mrf.mxu1 }
 0x2cc   : > { %v1760_v63 = vpop.f32.mrf.mxu3 }
 0x2cd   : > { %v1761_v54 = vadd.f32 %v1760_v63, %v1659_v60 }
 0x2ce   : > { %v4683_v62 = vpop.f32.mrf.mxu1 }
 0x2cf   : > { %v1782_v8 = vmax.f32 %v1761_v54, 0.0  ;;  %v1631_v54 = vpop.permute.xlu2 %1630 }
 0x2d4   : > { %v1762_v51 = vpop.f32.mrf.mxu3 }
 0x2d5   : > { %v1763_v57 = vadd.f32 %v1762_v51, %v1663_v42 }
 0x2d6   : > { %v4685_v44 = vpop.f32.mrf.mxu1 }
 0x2d7   : > { %v1783_v27 = vmax.f32 %v1763_v57, 0.0 }
 0x2d9   : > { %v1792_v28 = vpack.c.bf16 %v1783_v27, %v1782_v8  ;;  %v1623_v8 = vpop.permute.xlu1 %1622 }
 0x2dc   : > { %v1765_v45 = vpop.f32.mrf.mxu3 }
 0x2dd   : > { %v1766_v32 = vadd.f32 %v1765_v45, %v1667_v39  ;;  %v1619_v45 = vpop.permute.xlu0 %1618 }
 0x2de   : > { %v4687_v41 = vpop.f32.mrf.mxu1  ;;  %v1736_v49 = vadd.f32 %v4685_v44, %v1619_v45  ;;  %v3687_v44 = vld [vmem:[%s5183_s4] sm:$0xff] }
 0x2df   : > { %v1784_v43 = vmax.f32 %v1766_v32, 0.0 }
 0x2e1   : > { %v1868_v45 = vpop.permute.xlu1 %1867 }
 0x2e4   : > { %v1767_v38 = vpop.f32.mrf.mxu3 }
 0x2e5   : > { %v1768_v23 = vadd.f32 %v1767_v38, %v1671_v34 }
 0x2e6   : > { %v1740_v1 = vpop.f32.mrf.mxu1 }
 0x2e7   : > { %v1785_v15 = vmax.f32 %v1768_v23, 0.0  ;;  %v1741_v27 = vadd.f32 %v1740_v1, %v1627_v52  ;;  %v3690_v52 = vld [vmem:[%s5183_s4 + $0x18] sm:$0xff] }
 0x2e9   : > { %v1793_v40 = vpack.c.bf16 %v1785_v15, %v1784_v43 }
 0x2eb   : > { %1922 = vmatpush.bf16.msra.mxu2 %v1793_v40  ;;  %3735 = vmatpush.bf16.msrb.mxu3 %v1793_v40  ;;  %v1738_v40 = vadd.f32 %v4687_v41, %v1623_v8  ;;  %v1772_v41 = vmax.f32 %v1736_v49, 0.0 }
 0x2ee   : > { %v1742_v20 = vpop.f32.mrf.mxu1 }
 0x2ef   : > { %1923 = vmatpush.bf16.msra.mxu2 %v1792_v28  ;;  %3736 = vmatpush.bf16.msrb.mxu3 %v1792_v28  ;;  %v1743_v38 = vadd.f32 %v1742_v20, %v1631_v54  ;;  %v1611_v20 = vpop.permute.xlu2 %1610  ;;  %v1864_v54 = vpop.permute.xlu1 %1863 }
 0x2f1   : > { %v1775_v28 = vmax.f32 %v1743_v38, 0.0 }
 0x2f6   : > { %v1745_v48 = vpop.f32.mrf.mxu1 }
 0x2f7   : > { %v1746_v57 = vadd.f32 %v1745_v48, %v1635_v21  ;;  %v1615_v48 = vpop.permute.xlu0 %1614  ;;  %v3694_v21 = vld [vmem:[%s5183_s4 + $0x38] sm:$0xff] }
 0x2f8   : > { %v1733_v1 = vadd.f32 %v4683_v62, %v1615_v48  ;;  %v3693_v62 = vld [vmem:[%s5183_s4 + $0x30] sm:$0xff] }
 0x2f9   : > { %v1776_v15 = vmax.f32 %v1746_v57, 0.0 }
 0x2fe   : > { %v1747_v17 = vpop.f32.mrf.mxu1 }
 0x2ff   : > { %v1748_v32 = vadd.f32 %v1747_v17, %v1639_v30  ;;  %v1860_v57 = vpop.permute.xlu0 %1859 }
 0x301   : > { %v1777_v43 = vmax.f32 %v1748_v32, 0.0 }
 0x303   : > { %v1789_v17 = vpack.c.bf16 %v1777_v43, %v1776_v15 }
 0x306   : > { %v1750_v5 = vpop.f32.mrf.mxu1 }
 0x307   : > { %v1751_v63 = vadd.f32 %v1750_v5, %v1643_v35  ;;  %v1774_v5 = vmax.f32 %v1741_v27, 0.0 }
 0x309   : > { %v1778_v34 = vmax.f32 %v1751_v63, 0.0  ;;  %v1788_v35 = vpack.c.bf16 %v1775_v28, %v1774_v5 }
 0x30e   : > { %v1752_v19 = vpop.f32.mrf.mxu1 }
 0x30f   : > { %v1753_v26 = vadd.f32 %v1752_v19, %v1647_v12  ;;  %v1731_v19 = vadd.f32 %v4681_v29, %v1611_v20  ;;  %v3688_v29 = vld [vmem:[%s5183_s4 + $0x8] sm:$0xff] }
 0x311   : > { %v1779_v42 = vmax.f32 %v1753_v26, 0.0  ;;  %v3692_v26 = vld [vmem:[%s5183_s4 + $0x28] sm:$0xff] }
 0x313   : > { %v1790_v23 = vpack.c.bf16 %v1779_v42, %v1778_v34  ;;  %v1872_v34 = vpop.permute.xlu2 %1871 }
 0x316   : > { %v1755_v33 = vpop.f32.mrf.mxu1 }
 0x317   : > { %v1756_v55 = vadd.f32 %v1755_v33, %v1651_v36  ;;  %v1773_v36 = vmax.f32 %v1738_v40, 0.0  ;;  %v1770_v33 = vmax.f32 %v1731_v19, 0.0 }
 0x319   : > { %v1780_v51 = vmax.f32 %v1756_v55, 0.0  ;;  %v1787_v12 = vpack.c.bf16 %v1773_v36, %v1772_v41  ;;  %v3689_v55 = vld [vmem:[%s5183_s4 + $0x10] sm:$0xff]  ;;  %v3965_v41 = vmov 3  }
 0x31a   : > { %3818 = vset.pattern.permute.xlu1 %v3965_v41  ;;  %3817 = vset.pattern.permute.xlu0 %v3965_v41 }
 0x31b   : > { %2072 = vperm.xlu1 %3818, %v4600_v4   ;;  %2068 = vperm.xlu0 %3817, %v4606_v10  }
 0x31c   : > { %3819 = vset.pattern.permute.xlu2 %v3965_v41 }
 0x31d   : > { %2060 = vperm.xlu2 %3819, %v4612_v2  }
 0x31e   : > { %v1757_v14 = vpop.f32.mrf.mxu1 }
 0x31f   : > { %v1758_v47 = vadd.f32 %v1757_v14, %v1655_v22  ;;  %v1771_v22 = vmax.f32 %v1733_v1, 0.0  ;;  %v3691_v14 = vld [vmem:[%s5183_s4 + $0x20] sm:$0xff] }
 0x321   : > { %v1781_v39 = vmax.f32 %v1758_v47, 0.0  ;;  %v1786_v30 = vpack.c.bf16 %v1771_v22, %v1770_v33  ;;  %v1856_v33 = vpop.permute.xlu1 %1855 }
 0x323   : > { %v1791_v60 = vpack.c.bf16 %v1781_v39, %v1780_v51  ;;  %2064 = vperm.xlu1 %3818, %v4506_v59   ;;  %2056 = vperm.xlu0 %3817, %v4622_v37  }
 0x325   : > { %1924 = vmatpush.bf16.msra.mxu2 %v1791_v60  ;;  %3737 = vmatpush.bf16.msrb.mxu3 %v1791_v60 }
 0x326   : > { %2052 = vperm.xlu2 %3819, %v4536_v6  }
 0x329   : > { %1925 = vmatpush.bf16.msra.mxu2 %v1790_v23  ;;  %3738 = vmatpush.bf16.msrb.mxu3 %v1790_v23 }
 0x32b   : > { %2044 = vperm.xlu1 %3818, %v4472_v11   ;;  %2036 = vperm.xlu0 %3817, %v4631_v18  }
 0x32d   : > { %1926 = vmatpush.bf16.msra.mxu2 %v1789_v17  ;;  %3739 = vmatpush.bf16.msrb.mxu3 %v1789_v17 }
 0x32e   : > { %2048 = vperm.xlu2 %3819, %v4542_v13  }
 0x331   : > { %1927 = vmatpush.bf16.msra.mxu2 %v1788_v35  ;;  %3740 = vmatpush.bf16.msrb.mxu3 %v1788_v35  ;;  %v1852_v35 = vpop.permute.xlu2 %1851 }
 0x333   : > { %2040 = vperm.xlu1 %3818, %v4482_v58   ;;  %2032 = vperm.xlu0 %3817, %v4643_v61  }
 0x335   : > { %1928 = vmatpush.bf16.msra.mxu2 %v1787_v12  ;;  %3741 = vmatpush.bf16.msrb.mxu3 %v1787_v12 }
 0x336   : > { %2028 = vperm.xlu2 %3819, %v4552_v25  }
 0x339   : > { %1929 = vmatpush.bf16.msra.mxu2 %v1786_v30  ;;  %3742 = vmatpush.bf16.msrb.mxu3 %v1786_v30  ;;  %v1844_v22 = vpop.permute.xlu2 %1843  ;;  %v1848_v30 = vpop.permute.xlu0 %1847 }
 0x33b   : > { %2020 = vperm.xlu1 %3818, %v4490_v3   ;;  %2012 = vperm.xlu0 %3817, %v4651_v31  }
 0x33c   : > { %1930 = vmatmul.bf16.vlgmr.msra.gmra.mxu2 %v3687_v44  ;;  %1960 = vmatmul.bf16.vlgmr.msrb.gmra.mxu3 %v3693_v62 }
 0x33e   : > { %2024 = vperm.xlu2 %3819, %v4558_v24  }
 0x341   : > { %v1840_v62 = vpop.permute.xlu2 %1839 }
 0x343   : > { %2016 = vperm.xlu1 %3818, %v4501_v46   ;;  %v3698_v46 = vld [vmem:[%s5184_s5 + $0x18] sm:$0xff] }
 0x34c   : > { %1935 = vmatmul.bf16.gmra.mxu2 %v3688_v29  ;;  %1965 = vmatmul.bf16.gmra.mxu3 %v3694_v21  ;;  %v1836_v29 = vpop.permute.xlu1 %1835 }
 0x354   : > { %v1832_v11 = vpop.permute.xlu1 %1831 }
 0x35c   : > { %1940 = vmatmul.bf16.gmra.mxu2 %v3689_v55  ;;  %v1828_v55 = vpop.permute.xlu0 %1827 }
 0x36c   : > { %1945 = vmatmul.bf16.gmra.mxu2 %v3690_v52 }
 0x37c   : > { %1950 = vmatmul.bf16.gmra.mxu2 %v3691_v14 }
 0x38c   : > { %1955 = vmatmul.bf16.gmra.mxu2 %v3692_v26 }
 0x3bf   : > { %v4733_v47 = vpop.f32.mrf.mxu2  ;;  %v1961_v63 = vpop.f32.mrf.mxu3 }
 0x3c0   : > { %v1962_v38 = vadd.f32 %v1961_v63, %v1860_v57 }
 0x3c2   : > { %v1983_v40 = vmax.f32 %v1962_v38, 0.0 }
 0x3c7   : > { %v4735_v51 = vpop.f32.mrf.mxu2  ;;  %v1963_v39 = vpop.f32.mrf.mxu3 }
 0x3c8   : > { %v1964_v43 = vadd.f32 %v1963_v39, %v1864_v54 }
 0x3ca   : > { %v1984_v28 = vmax.f32 %v1964_v43, 0.0 }
 0x3cc   : > { %v1993_v49 = vpack.c.bf16 %v1984_v28, %v1983_v40 }
 0x3cf   : > { %v4737_v32 = vpop.f32.mrf.mxu2  ;;  %v1966_v42 = vpop.f32.mrf.mxu3 }
 0x3d0   : > { %v1967_v60 = vadd.f32 %v1966_v42, %v1868_v45  ;;  %v1820_v42 = vpop.permute.xlu2 %1819 }
 0x3d2   : > { %v1985_v27 = vmax.f32 %v1967_v60, 0.0 }
 0x3d7   : > { %v4739_v23 = vpop.f32.mrf.mxu2  ;;  %v1968_v8 = vpop.f32.mrf.mxu3 }
 0x3d8   : > { %v1969_v15 = vadd.f32 %v1968_v8, %v1872_v34  ;;  %v1816_v58 = vpop.permute.xlu2 %1815 }
 0x3da   : > { %v1986_v17 = vmax.f32 %v1969_v15, 0.0  ;;  %v1824_v15 = vpop.permute.xlu0 %1823 }
 0x3dc   : > { %v1994_v48 = vpack.c.bf16 %v1986_v17, %v1985_v27  ;;  %v1939_v17 = vadd.f32 %v4739_v23, %v1824_v15 }
 0x3de   : > { %2123 = vmatpush.bf16.msra.mxu3 %v1994_v48 }
 0x3df   : > { %v1941_v5 = vpop.f32.mrf.mxu2 }
 0x3e0   : > { %v1942_v40 = vadd.f32 %v1941_v5, %v1828_v55  ;;  %v1934_v5 = vadd.f32 %v4735_v51, %v1816_v58  ;;  %v3696_v51 = vld [vmem:[%s5184_s5 + $0x8] sm:$0xff] }
 0x3e2   : > { %2124 = vmatpush.bf16.msra.mxu3 %v1993_v49 }
 0x3e7   : > { %v1943_v20 = vpop.f32.mrf.mxu2 }
 0x3e8   : > { %v1944_v43 = vadd.f32 %v1943_v20, %v1832_v11  ;;  %v1812_v20 = vpop.permute.xlu1 %1811 }
 0x3e9   : > { %v1932_v23 = vadd.f32 %v4733_v47, %v1812_v20  ;;  %v3697_v47 = vld [vmem:[%s5184_s5 + $0x10] sm:$0xff] }
 0x3ea   : > { %v1976_v48 = vmax.f32 %v1944_v43, 0.0 }
 0x3ef   : > { %v1946_v1 = vpop.f32.mrf.mxu2 }
 0x3f0   : > { %v1947_v34 = vadd.f32 %v1946_v1, %v1836_v29  ;;  %v1937_v1 = vadd.f32 %v4737_v32, %v1820_v42  ;;  %v3701_v29 = vld [vmem:[%s5184_s5 + $0x30] sm:$0xff] }
 0x3f2   : > { %v1977_v28 = vmax.f32 %v1947_v34, 0.0  ;;  %v1973_v41 = vmax.f32 %v1937_v1, 0.0 }
 0x3f7   : > { %v1948_v36 = vpop.f32.mrf.mxu2 }
 0x3f8   : > { %v1949_v60 = vadd.f32 %v1948_v36, %v1840_v62  ;;  %v1975_v36 = vmax.f32 %v1942_v40, 0.0  ;;  %v4779_v62 = vpop.permute.xlu1 %2072 }
 0x3fa   : > { %v1978_v8 = vmax.f32 %v1949_v60, 0.0 }
 0x3fc   : > { %v1990_v49 = vpack.c.bf16 %v1978_v8, %v1977_v28 }
 0x3ff   : > { %v1951_v19 = vpop.f32.mrf.mxu2 }
 0x400   : > { %v1952_v63 = vadd.f32 %v1951_v19, %v1844_v22  ;;  %v1989_v19 = vpack.c.bf16 %v1976_v48, %v1975_v36  ;;  %v1972_v22 = vmax.f32 %v1934_v5, 0.0  ;;  %v2065_v55 = vpop.permute.xlu1 %2064 }
 0x402   : > { %v1979_v38 = vmax.f32 %v1952_v63, 0.0  ;;  %v2061_v63 = vpop.permute.xlu2 %2060 }
 0x407   : > { %v1953_v12 = vpop.f32.mrf.mxu2 }
 0x408   : > { %v1954_v14 = vadd.f32 %v1953_v12, %v1848_v30  ;;  %v1971_v12 = vmax.f32 %v1932_v23, 0.0  ;;  %v3699_v30 = vld [vmem:[%s5184_s5 + $0x20] sm:$0xff] }
 0x40a   : > { %v1980_v54 = vmax.f32 %v1954_v14, 0.0  ;;  %v1987_v32 = vpack.c.bf16 %v1972_v22, %v1971_v12  ;;  %v4786_v14 = vpop.permute.xlu1 %2044  ;;  %v4791_v42 = vpop.permute.xlu2 %2052 }
 0x40c   : > { %v1991_v27 = vpack.c.bf16 %v1980_v54, %v1979_v38 }
 0x40f   : > { %v1956_v44 = vpop.f32.mrf.mxu2 }
 0x410   : > { %v1957_v21 = vadd.f32 %v1956_v44, %v1852_v35  ;;  %v1974_v35 = vmax.f32 %v1939_v17, 0.0  ;;  %v3700_v44 = vld [vmem:[%s5184_s5 + $0x28] sm:$0xff] }
 0x412   : > { %v1981_v39 = vmax.f32 %v1957_v21, 0.0  ;;  %v1988_v3 = vpack.c.bf16 %v1974_v35, %v1973_v41  ;;  %v2069_v21 = vpop.permute.xlu0 %2068  ;;  %v4793_v11 = vpop.permute.xlu2 %2048 }
 0x417   : > { %v1958_v52 = vpop.f32.mrf.mxu2 }
 0x418   : > { %v1959_v26 = vadd.f32 %v1958_v52, %v1856_v33  ;;  %v3695_v33 = vld [vmem:[%s5184_s5] sm:$0xff] }
 0x41a   : > { %v1982_v45 = vmax.f32 %v1959_v26, 0.0  ;;  %v4784_v52 = vpop.permute.xlu0 %2056  ;;  %v3702_v26 = vld [vmem:[%s5184_s5 + $0x38] sm:$0xff]  ;;  %v2029_v28 = vpop.permute.xlu2 %2028 }
 0x41c   : > { %v1992_v57 = vpack.c.bf16 %v1982_v45, %v1981_v39  ;;  %v2041_v45 = vpop.permute.xlu1 %2040 }
 0x41e   : > { %2125 = vmatpush.bf16.msra.mxu3 %v1992_v57 }
 0x422   : > { %2126 = vmatpush.bf16.msra.mxu3 %v1991_v27  ;;  %v2037_v39 = vpop.permute.xlu0 %2036 }
 0x424   : > { %v2021_v54 = vpop.permute.xlu1 %2020 }
 0x426   : > { %2127 = vmatpush.bf16.msra.mxu3 %v1990_v49  ;;  %v2025_v49 = vpop.permute.xlu2 %2024 }
 0x42a   : > { %2128 = vmatpush.bf16.msra.mxu3 %v1989_v19  ;;  %v2033_v60 = vpop.permute.xlu0 %2032 }
 0x42c   : > { %v2017_v38 = vpop.permute.xlu1 %2016 }
 0x42e   : > { %2129 = vmatpush.bf16.msra.mxu3 %v1988_v3 }
 0x432   : > { %2130 = vmatpush.bf16.msra.mxu3 %v1987_v32  ;;  %v2013_v34 = vpop.permute.xlu0 %2012 }
 0x435   : > { %2131 = vmatmul.bf16.vlgmr.msra.gmra.mxu3 %v3695_v33 }
 0x445   : > { %2136 = vmatmul.bf16.gmra.mxu3 %v3696_v51 }
 0x455   : > { %2141 = vmatmul.bf16.gmra.mxu3 %v3697_v47 }
 0x465   : > { %2146 = vmatmul.bf16.gmra.mxu3 %v3698_v46 }
 0x475   : > { %2151 = vmatmul.bf16.gmra.mxu3 %v3699_v30 }
 0x485   : > { %2156 = vmatmul.bf16.gmra.mxu3 %v3700_v44 }
 0x495   : > { %2161 = vmatmul.bf16.gmra.mxu3 %v3701_v29 }
 0x4a5   : > { %2166 = vmatmul.bf16.gmra.mxu3 %v3702_v26 }
 0x4b8   : > { %v2132_v57 = vpop.f32.mrf.mxu3 }
 0x4b9   : > { %v2133_v43 = vadd.f32 %v2132_v57, %v2013_v34 }
 0x4bb   : > { %v2172_v15 = vmax.f32 %v2133_v43, 0.0 }
 0x4c0   : > { %v2134_v8 = vpop.f32.mrf.mxu3 }
 0x4c1   : > { %v2135_v27 = vadd.f32 %v2134_v8, %v2017_v38 }
 0x4c3   : > { %v2173_v40 = vmax.f32 %v2135_v27, 0.0  ;;  %v3966_v27 = vmov 4  }
 0x4c4   : > { %3821 = vset.pattern.permute.xlu0 %v3966_v27  ;;  %3820 = vset.pattern.permute.xlu2 %v3966_v27 }
 0x4c5   : > { %v4795_v17 = vpack.c.bf16 %v2173_v40, %v2172_v15  ;;  %2499 = vperm.xlu0 %3821, %v4600_v4   ;;  %2495 = vperm.xlu2 %3820, %v4606_v10   ;;  %v4812_v4 = vld [vmem:[%s5189_s10 + $0x40] sm:$0xff] }
 0x4c6   : > { %3822 = vset.pattern.permute.xlu1 %v3966_v27 }
 0x4c7   : > { %2487 = vperm.xlu1 %3822, %v4612_v2  }
 0x4c8   : > { %v2137_v48 = vpop.f32.mrf.mxu3 }
 0x4c9   : > { %v2138_v58 = vadd.f32 %v2137_v48, %v2021_v54 }
 0x4cb   : > { %v2174_v20 = vmax.f32 %v2138_v58, 0.0 }
 0x4cd   : > { %2471 = vperm.xlu0 %3821, %v4812_v4   ;;  %2491 = vperm.xlu2 %3820, %v4506_v59   ;;  %v4823_v59 = vld [vmem:[%s5189_s10 + $0x38] sm:$0xff] }
 0x4cf   : > { %2479 = vperm.xlu1 %3822, %v4536_v6   ;;  %v3704_v6 = vld [vmem:[%s5185_s6 + $0x8] sm:$0xff] }
 0x4d0   : > { %v2139_v1 = vpop.f32.mrf.mxu3 }
 0x4d1   : > { %v2140_v36 = vadd.f32 %v2139_v1, %v2025_v49 }
 0x4d3   : > { %v2175_v5 = vmax.f32 %v2140_v36, 0.0 }
 0x4d5   : > { %v4797_v35 = vpack.c.bf16 %v2175_v5, %v2174_v20  ;;  %2467 = vperm.xlu0 %3821, %v4823_v59   ;;  %2483 = vperm.xlu2 %3820, %v4622_v37   ;;  %v3705_v37 = vld [vmem:[%s5185_s6 + $0x10] sm:$0xff] }
 0x4d7   : > { %2475 = vperm.xlu1 %3822, %v4542_v13   ;;  %v4844_v13 = vld [vmem:[%s5189_s10 + $0x8] sm:$0xff] }
 0x4d8   : > { %v2142_v19 = vpop.f32.mrf.mxu3 }
 0x4d9   : > { %v2143_v23 = vadd.f32 %v2142_v19, %v2029_v28  ;;  %v4836_v19 = vld [vmem:[%s5189_s10 + $0x10] sm:$0xff] }
 0x4db   : > { %v2176_v3 = vmax.f32 %v2143_v23, 0.0  ;;  %v3715_v23 = vld [vmem:[%s5186_s7 + $0x20] sm:$0xff] }
 0x4dd   : > { %2447 = vperm.xlu0 %3821, %v4836_v19   ;;  %2463 = vperm.xlu2 %3820, %v4631_v18   ;;  %v3706_v18 = vld [vmem:[%s5185_s6 + $0x18] sm:$0xff] }
 0x4df   : > { %2455 = vperm.xlu1 %3822, %v4552_v25   ;;  %v3711_v25 = vld [vmem:[%s5186_s7] sm:$0xff] }
 0x4e0   : > { %v2144_v41 = vpop.f32.mrf.mxu3 }
 0x4e1   : > { %v2145_v22 = vadd.f32 %v2144_v41, %v2033_v60  ;;  %v3710_v41 = vld [vmem:[%s5185_s6 + $0x38] sm:$0xff] }
 0x4e3   : > { %v2177_v12 = vmax.f32 %v2145_v22, 0.0  ;;  %v3716_v22 = vld [vmem:[%s5186_s7 + $0x28] sm:$0xff] }
 0x4e5   : > { %v4799_v32 = vpack.c.bf16 %v2177_v12, %v2176_v3  ;;  %2443 = vperm.xlu0 %3821, %v4844_v13   ;;  %2459 = vperm.xlu2 %3820, %v4643_v61   ;;  %v3707_v61 = vld [vmem:[%s5185_s6 + $0x20] sm:$0xff] }
 0x4e7   : > { %2451 = vperm.xlu1 %3822, %v4558_v24   ;;  %v3712_v24 = vld [vmem:[%s5186_s7 + $0x8] sm:$0xff] }
 0x4e8   : > { %v2147_v33 = vpop.f32.mrf.mxu3 }
 0x4e9   : > { %v2148_v51 = vadd.f32 %v2147_v33, %v2037_v39  ;;  %v3703_v39 = vld [vmem:[%s5185_s6] sm:$0xff] }
 0x4ea   : > { %3621 = vmatmul.msk.bf16.vlgmr.msrb.gmra.mxu1 %vm1495_vm15, %v3703_v39 }
 0x4eb   : > { %v2178_v30 = vmax.f32 %v2148_v51, 0.0 }
 0x4ed   : > { %2439 = vperm.xlu2 %3820, %v4651_v31   ;;  %v3713_v31 = vld [vmem:[%s5186_s7 + $0x10] sm:$0xff] }
 0x4f0   : > { %v2149_v47 = vpop.f32.mrf.mxu3 }
 0x4f1   : > { %v2150_v46 = vadd.f32 %v2149_v47, %v2041_v45 }
 0x4f3   : > { %v2179_v44 = vmax.f32 %v2150_v46, 0.0 }
 0x4f5   : > { %v2191_v29 = vpack.c.bf16 %v2179_v44, %v2178_v30  ;;  %v3718_v44 = vld [vmem:[%s5186_s7 + $0x38] sm:$0xff] }
 0x4f8   : > { %v2152_v26 = vpop.f32.mrf.mxu3 }
 0x4fa   : > { %3622 = vmatmul.msk.bf16.gmra.mxu1 %vm1495_vm15, %v3704_v6 }
 0x500   : > { %v2154_v54 = vpop.f32.mrf.mxu3 }
 0x501   : > { %v2155_v58 = vadd.f32 %v2154_v54, %v4793_v11 }
 0x508   : > { %v2157_v57 = vpop.f32.mrf.mxu3 }
 0x50a   : > { %3623 = vmatmul.msk.bf16.gmra.mxu1 %vm1495_vm15, %v3705_v37 }
 0x510   : > { %v2159_v34 = vpop.f32.mrf.mxu3 }
 0x511   : > { %v2160_v2 = vadd.f32 %v2159_v34, %v4784_v52  ;;  %v2153_v52 = vadd.f32 %v2152_v26, %v4786_v14  ;;  %v3708_v14 = vld [vmem:[%s5185_s6 + $0x28] sm:$0xff] }
 0x513   : > { %v2183_v1 = vmax.f32 %v2160_v2, 0.0  ;;  %v2180_v20 = vmax.f32 %v2153_v52, 0.0 }
 0x518   : > { %v2162_v38 = vpop.f32.mrf.mxu3 }
 0x519   : > { %v2163_v10 = vadd.f32 %v2162_v38, %v2061_v63 }
 0x51a   : > { %3624 = vmatmul.msk.bf16.gmra.mxu1 %vm1495_vm15, %v3706_v18 }
 0x51b   : > { %v2184_v49 = vmax.f32 %v2163_v10, 0.0 }
 0x51f   : > { %v4895_v3 = vpop.permute.xlu2 %2495 }
 0x520   : > { %v2164_v43 = vpop.f32.mrf.mxu3 }
 0x521   : > { %v2165_v15 = vadd.f32 %v2164_v43, %v2065_v55 }
 0x527   : > { %v4897_v12 = vpop.permute.xlu2 %2491 }
 0x528   : > { %v2167_v8 = vpop.f32.mrf.mxu3 }
 0x529   : > { %v2168_v45 = vadd.f32 %v2167_v8, %v2069_v21  ;;  %v2185_v21 = vmax.f32 %v2165_v15, 0.0 }
 0x52a   : > { %3625 = vmatmul.msk.bf16.gmra.mxu1 %vm1495_vm15, %v3707_v61 }
 0x52b   : > { %v2186_v28 = vmax.f32 %v2168_v45, 0.0  ;;  %v2194_v36 = vpack.c.bf16 %v2185_v21, %v2184_v49 }
 0x52f   : > { %v4904_v47 = vpop.permute.xlu2 %2483 }
 0x530   : > { %v2169_v60 = vpop.f32.mrf.mxu3 }
 0x531   : > { %v2170_v40 = vadd.f32 %v2169_v60, %v4779_v62  ;;  %v2158_v62 = vadd.f32 %v2157_v57, %v4791_v42  ;;  %v2181_v42 = vmax.f32 %v2155_v58, 0.0 }
 0x533   : > { %v2187_v48 = vmax.f32 %v2170_v40, 0.0  ;;  %v2182_v63 = vmax.f32 %v2158_v62, 0.0  ;;  %v2192_v5 = vpack.c.bf16 %v2181_v42, %v2180_v20 }
 0x535   : > { %v2195_v55 = vpack.c.bf16 %v2187_v48, %v2186_v28  ;;  %v2193_v11 = vpack.c.bf16 %v2183_v1, %v2182_v63 }
 0x537   : > { %2276 = vmatpush.bf16.msrb.mxu0 %v2195_v55  ;;  %v4902_v33 = vpop.permute.xlu0 %2499  ;;  %v2464_v26 = vpop.permute.xlu2 %2463 }
 0x53a   : > { %3626 = vmatmul.msk.bf16.gmra.mxu1 %vm1495_vm15, %v3708_v14 }
 0x53b   : > { %2277 = vmatpush.bf16.msrb.mxu0 %v2194_v36 }
 0x53f   : > { %2278 = vmatpush.bf16.msrb.mxu0 %v2193_v11  ;;  %v4906_v46 = vpop.permute.xlu0 %2471  ;;  %v2460_v38 = vpop.permute.xlu2 %2459 }
 0x543   : > { %2279 = vmatpush.bf16.msrb.mxu0 %v2192_v5 }
 0x547   : > { %2280 = vmatpush.bf16.msrb.mxu0 %v2191_v29  ;;  %v4911_v29 = vpop.permute.xlu1 %2487  ;;  %v2468_v54 = vpop.permute.xlu0 %2467 }
 0x548   : > { %v2440_v60 = vpop.permute.xlu2 %2439 }
 0x54b   : > { %2281 = vmatpush.bf16.msrb.mxu0 %v4799_v32  ;;  %v3717_v32 = vld [vmem:[%s5186_s7 + $0x30] sm:$0xff] }
 0x54f   : > { %2282 = vmatpush.bf16.msrb.mxu0 %v4797_v35  ;;  %v3709_v35 = vld [vmem:[%s5185_s6 + $0x30] sm:$0xff]  ;;  %v4913_v34 = vpop.permute.xlu1 %2479  ;;  %v2448_v43 = vpop.permute.xlu0 %2447 }
 0x550   : > { %3627 = vmatmul.msk.bf16.gmra.mxu1 %vm1495_vm15, %v3709_v35 }
 0x553   : > { %2283 = vmatpush.bf16.msrb.mxu0 %v4795_v17  ;;  %v3714_v17 = vld [vmem:[%s5186_s7 + $0x18] sm:$0xff] }
 0x556   : > { %2284 = vmatmul.bf16.vlgmr.msrb.gmra.mxu0 %v3711_v25 }
 0x557   : > { %v4915_v45 = vpop.permute.xlu1 %2475  ;;  %v2444_v40 = vpop.permute.xlu0 %2443 }
 0x55f   : > { %v2456_v62 = vpop.permute.xlu1 %2455 }
 0x560   : > { %3628 = vmatmul.msk.bf16.gmra.mxu1 %vm1495_vm15, %v3710_v41 }
 0x566   : > { %2289 = vmatmul.bf16.gmra.mxu0 %v3712_v24 }
 0x567   : > { %v2398_v51 = vpop.f32.mrf.mxu1  ;;  %v2452_v52 = vpop.permute.xlu1 %2451 }
 0x56f   : > { %v2400_v30 = vpop.f32.mrf.mxu1 }
 0x576   : > { %2294 = vmatmul.bf16.gmra.mxu0 %v3713_v31 }
 0x577   : > { %v2403_v57 = vpop.f32.mrf.mxu1 }
 0x57f   : > { %v2405_v27 = vpop.f32.mrf.mxu1 }
 0x586   : > { %2299 = vmatmul.bf16.gmra.mxu0 %v3714_v17 }
 0x587   : > { %v2408_v48 = vpop.f32.mrf.mxu1 }
 0x58f   : > { %v2410_v36 = vpop.f32.mrf.mxu1 }
 0x596   : > { %2304 = vmatmul.bf16.gmra.mxu0 %v3715_v23 }
 0x597   : > { %v2413_v37 = vpop.f32.mrf.mxu1 }
 0x59f   : > { %v2415_v31 = vpop.f32.mrf.mxu1 }
 0x5a6   : > { %2309 = vmatmul.bf16.gmra.mxu0 %v3716_v22 }
 0x5b6   : > { %2314 = vmatmul.bf16.gmra.mxu0 %v3717_v32 }
 0x5c6   : > { %2319 = vmatmul.bf16.gmra.mxu0 %v3718_v44 }
 0x5d3   : > { %v2285_v8 = vpop.f32.mrf.mxu0 }
 0x5d4   : > { %v2399_v39 = vadd.f32 %v2398_v51, %v2285_v8 }
 0x5d6   : > { %v2502_v10 = vadd.f32 %v2440_v60, %v2399_v39 }
 0x5d8   : > { %v2518_v21 = vmax.f32 %v2502_v10, 0.0 }
 0x5db   : > { %v2287_v15 = vpop.f32.mrf.mxu0 }
 0x5dc   : > { %v2401_v28 = vadd.f32 %v2400_v30, %v2287_v15  ;;  %v2418_v30 = vpop.f32.mrf.mxu1 }
 0x5de   : > { %v2503_v2 = vadd.f32 %v2444_v40, %v2401_v28 }
 0x5e0   : > { %v2519_v55 = vmax.f32 %v2503_v2, 0.0 }
 0x5e2   : > { %v4917_v49 = vpack.c.bf16 %v2519_v55, %v2518_v21 }
 0x5e3   : > { %v2290_v58 = vpop.f32.mrf.mxu0 }
 0x5e4   : > { %v2404_v1 = vadd.f32 %v2403_v57, %v2290_v58 }
 0x5e6   : > { %v2504_v63 = vadd.f32 %v2448_v43, %v2404_v1  ;;  %v3967_v1 = vmov 5  }
 0x5e7   : > { %3823 = vset.pattern.permute.xlu1 %v3967_v1  ;;  %3824 = vset.pattern.permute.xlu2 %v3967_v1 }
 0x5e8   : > { %v2520_v20 = vmax.f32 %v2504_v63, 0.0  ;;  %3825 = vset.pattern.permute.xlu0 %v3967_v1  ;;  %v3845_v63 = vld [vmem:[%s5189_s10 + $0x68] sm:$0xff] }
 0x5eb   : > { %v2292_v6 = vpop.f32.mrf.mxu0 }
 0x5ec   : > { %v2406_v42 = vadd.f32 %v2405_v27, %v2292_v6  ;;  %v2420_v27 = vpop.f32.mrf.mxu1  ;;  %v3844_v6 = vld [vmem:[%s5189_s10 + $0x60] sm:$0xff] }
 0x5ed   : > { %2607 = vperm.xlu0 %3825, %v3844_v6  }
 0x5ee   : > { %v2505_v11 = vadd.f32 %v2452_v52, %v2406_v42  ;;  %v3846_v42 = vld [vmem:[%s5189_s10 + $0x50] sm:$0xff] }
 0x5f0   : > { %v2521_v5 = vmax.f32 %v2505_v11, 0.0 }
 0x5f2   : > { %v4919_v25 = vpack.c.bf16 %v2521_v5, %v2520_v20  ;;  %v3847_v20 = vld [vmem:[%s5189_s10 + $0x48] sm:$0xff] }
 0x5f3   : > { %v2295_v18 = vpop.f32.mrf.mxu0 }
 0x5f4   : > { %v2409_v24 = vadd.f32 %v2408_v48, %v2295_v18  ;;  %v2423_v28 = vpop.f32.mrf.mxu1  ;;  %v3848_v18 = vld [vmem:[%s5189_s10 + $0x58] sm:$0xff] }
 0x5f5   : > { %2595 = vperm.xlu0 %3825, %v3847_v20  }
 0x5f6   : > { %v2506_v14 = vadd.f32 %v2456_v62, %v2409_v24 }
 0x5f8   : > { %v2522_v23 = vmax.f32 %v2506_v14, 0.0 }
 0x5fb   : > { %v2297_v61 = vpop.f32.mrf.mxu0 }
 0x5fc   : > { %v2411_v17 = vadd.f32 %v2410_v36, %v2297_v61  ;;  %v2425_v2 = vpop.f32.mrf.mxu1 }
 0x5fe   : > { %v2507_v35 = vadd.f32 %v2460_v38, %v2411_v17 }
 0x600   : > { %v2523_v41 = vmax.f32 %v2507_v35, 0.0  ;;  %v3849_v35 = vld [vmem:[%s5189_s10 + $0x20] sm:$0xff] }
 0x601   : > { %2575 = vperm.xlu0 %3825, %v3849_v35  }
 0x602   : > { %v4921_v22 = vpack.c.bf16 %v2523_v41, %v2522_v23 }
 0x603   : > { %v2300_v32 = vpop.f32.mrf.mxu0 }
 0x604   : > { %v2414_v51 = vadd.f32 %v2413_v37, %v2300_v32  ;;  %v2428_v55 = vpop.f32.mrf.mxu1 }
 0x606   : > { %v2508_v57 = vadd.f32 %v2464_v26, %v2414_v51  ;;  %v3842_v26 = vld [vmem:[%s5189_s10 + $0x70] sm:$0xff] }
 0x607   : > { %2615 = vperm.xlu1 %3823, %v3842_v26  }
 0x608   : > { %v2524_v39 = vmax.f32 %v2508_v57, 0.0 }
 0x60b   : > { %v2302_v44 = vpop.f32.mrf.mxu0 }
 0x60c   : > { %v2416_v43 = vadd.f32 %v2415_v31, %v2302_v44  ;;  %v2430_v58 = vpop.f32.mrf.mxu1 }
 0x60e   : > { %v2509_v8 = vadd.f32 %v2468_v54, %v2416_v43  ;;  %v3843_v54 = vld [vmem:[%s5189_s10 + $0x78] sm:$0xff] }
 0x60f   : > { %2619 = vperm.xlu2 %3824, %v3843_v54   ;;  %2611 = vperm.xlu1 %3823, %v3845_v63  }
 0x610   : > { %v2525_v60 = vmax.f32 %v2509_v8, 0.0 }
 0x612   : > { %v4923_v15 = vpack.c.bf16 %v2525_v60, %v2524_v39  ;;  %v3850_v39 = vld [vmem:[%s5189_s10 + $0x30] sm:$0xff] }
 0x613   : > { %v2305_v40 = vpop.f32.mrf.mxu0 }
 0x614   : > { %v2419_v10 = vadd.f32 %v2418_v30, %v2305_v40  ;;  %v2433_v52 = vpop.f32.mrf.mxu1 }
 0x616   : > { %v2510_v40 = vadd.f32 %v4906_v46, %v2419_v10  ;;  %v3719_v46 = vld [vmem:[#allocation2] sm:$0xff]  ;;  %v3721_v10 = vld [vmem:[#allocation2 + $0x10] sm:$0xff] }
 0x617   : > { %2599 = vperm.xlu2 %3824, %v3846_v42   ;;  %2603 = vperm.xlu1 %3823, %v3848_v18  }
 0x61b   : > { %v2307_v38 = vpop.f32.mrf.mxu0 }
 0x61c   : > { %v2435_v24 = vpop.f32.mrf.mxu1  ;;  %v2421_v57 = vadd.f32 %v2420_v27, %v2307_v38 }
 0x61f   : > { %2591 = vperm.xlu2 %3824, %v4812_v4   ;;  %2583 = vperm.xlu1 %3823, %v3850_v39  }
 0x623   : > { %v2310_v48 = vpop.f32.mrf.mxu0 }
 0x624   : > { %v2424_v51 = vadd.f32 %v2423_v28, %v2310_v48 }
 0x627   : > { %2587 = vperm.xlu2 %3824, %v4823_v59   ;;  %v3852_v59 = vld [vmem:[%s5189_s10 + $0x28] sm:$0xff] }
 0x628   : > { %2579 = vperm.xlu1 %3823, %v3852_v59  }
 0x62b   : > { %v2312_v21 = vpop.f32.mrf.mxu0 }
 0x62c   : > { %v2426_v23 = vadd.f32 %v2425_v2, %v2312_v21  ;;  %v3722_v21 = vld [vmem:[#allocation2 + $0x18] sm:$0xff] }
 0x62e   : > { %v2513_v43 = vadd.f32 %v4904_v47, %v2426_v23  ;;  %v2511_v47 = vadd.f32 %v4915_v45, %v2421_v57  ;;  %v3853_v45 = vld [vmem:[%s5189_s10] sm:$0xff] }
 0x62f   : > { %2567 = vperm.xlu2 %3824, %v4836_v19   ;;  %v3720_v19 = vld [vmem:[#allocation2 + $0x8] sm:$0xff] }
 0x630   : > { %v2529_v27 = vmax.f32 %v2513_v43, 0.0  ;;  %v2527_v38 = vmax.f32 %v2511_v47, 0.0  ;;  %2559 = vperm.xlu1 %3823, %v3853_v45  }
 0x633   : > { %v2315_v62 = vpop.f32.mrf.mxu0 }
 0x634   : > { %v2429_v31 = vadd.f32 %v2428_v55, %v2315_v62  ;;  %v3723_v55 = vld [vmem:[#allocation2 + $0x20] sm:$0xff]  ;;  %v3724_v62 = vld [vmem:[#allocation2 + $0x28] sm:$0xff] }
 0x636   : > { %v2514_v30 = vadd.f32 %v4911_v29, %v2429_v31  ;;  %v3851_v29 = vld [vmem:[%s5189_s10 + $0x18] sm:$0xff] }
 0x637   : > { %2571 = vperm.xlu0 %3825, %v3851_v29   ;;  %2563 = vperm.xlu2 %3824, %v4844_v13  }
 0x63b   : > { %v2317_v36 = vpop.f32.mrf.mxu0 }
 0x63c   : > { %v2431_v37 = vadd.f32 %v2430_v58, %v2317_v36  ;;  %v3725_v58 = vld [vmem:[#allocation2 + $0x30] sm:$0xff] }
 0x63e   : > { %v2515_v41 = vadd.f32 %v4897_v12, %v2431_v37  ;;  %v2512_v12 = vadd.f32 %v4913_v34, %v2424_v51  ;;  %v2526_v34 = vmax.f32 %v2510_v40, 0.0 }
 0x640   : > { %v2528_v28 = vmax.f32 %v2512_v12, 0.0  ;;  %v2538_v2 = vpack.c.bf16 %v2527_v38, %v2526_v34 }
 0x642   : > { %v2539_v48 = vpack.c.bf16 %v2529_v27, %v2528_v28 }
 0x643   : > { %v2320_v11 = vpop.f32.mrf.mxu0 }
 0x644   : > { %v2434_v5 = vadd.f32 %v2433_v52, %v2320_v11 }
 0x646   : > { %v2516_v14 = vadd.f32 %v4895_v3, %v2434_v5  ;;  %v2531_v3 = vmax.f32 %v2515_v41, 0.0 }
 0x648   : > { %v2532_v4 = vmax.f32 %v2516_v14, 0.0 }
 0x64b   : > { %v2322_v61 = vpop.f32.mrf.mxu0 }
 0x64c   : > { %v2436_v17 = vadd.f32 %v2435_v24, %v2322_v61 }
 0x64e   : > { %v2517_v32 = vadd.f32 %v4902_v33, %v2436_v17  ;;  %v2530_v33 = vmax.f32 %v2514_v30, 0.0 }
 0x650   : > { %v2533_v44 = vmax.f32 %v2517_v32, 0.0  ;;  %v2540_v60 = vpack.c.bf16 %v2531_v3, %v2530_v33 }
 0x652   : > { %v2541_v8 = vpack.c.bf16 %v2533_v44, %v2532_v4 }
 0x654   : > { %2670 = vmatpush.bf16.msrb.mxu2 %v2541_v8 }
 0x658   : > { %2671 = vmatpush.bf16.msrb.mxu2 %v2540_v60 }
 0x65c   : > { %2672 = vmatpush.bf16.msrb.mxu2 %v2539_v48 }
 0x65f   : > { %v2608_v6 = vpop.permute.xlu0 %2607 }
 0x660   : > { %2673 = vmatpush.bf16.msrb.mxu2 %v2538_v2 }
 0x664   : > { %2674 = vmatpush.bf16.msrb.mxu2 %v4923_v15 }
 0x667   : > { %v2596_v11 = vpop.permute.xlu0 %2595 }
 0x668   : > { %2675 = vmatpush.bf16.msrb.mxu2 %v4921_v22 }
 0x669   : > { %v2620_v15 = vpop.permute.xlu2 %2619 }
 0x66c   : > { %2676 = vmatpush.bf16.msrb.mxu2 %v4919_v25 }
 0x670   : > { %2677 = vmatpush.bf16.msrb.mxu2 %v4917_v49  ;;  %v3726_v49 = vld [vmem:[#allocation2 + $0x38] sm:$0xff] }
 0x671   : > { %v2600_v25 = vpop.permute.xlu2 %2599 }
 0x673   : > { %2678 = vmatmul.bf16.vlgmr.msrb.gmra.mxu2 %v3719_v46  ;;  %v2576_v14 = vpop.permute.xlu0 %2575 }
 0x679   : > { %v2616_v13 = vpop.permute.xlu1 %2615  ;;  %v4977_v26 = vpop.permute.xlu2 %2591 }
 0x681   : > { %v2612_v22 = vpop.permute.xlu1 %2611  ;;  %v2588_v36 = vpop.permute.xlu2 %2587 }
 0x683   : > { %2683 = vmatmul.bf16.gmra.mxu2 %v3720_v19 }
 0x689   : > { %v2604_v1 = vpop.permute.xlu1 %2603  ;;  %v2568_v63 = vpop.permute.xlu2 %2567 }
 0x691   : > { %v2584_v54 = vpop.permute.xlu1 %2583  ;;  %v2564_v5 = vpop.permute.xlu2 %2563 }
 0x693   : > { %2688 = vmatmul.bf16.gmra.mxu2 %v3721_v10 }
 0x69a   : > { %v2580_v52 = vpop.permute.xlu1 %2579 }
 0x6a2   : > { %v2560_v20 = vpop.permute.xlu1 %2559 }
 0x6a3   : > { %2693 = vmatmul.bf16.gmra.mxu2 %v3722_v21 }
 0x6a9   : > { %v2572_v23 = vpop.permute.xlu0 %2571 }
 0x6b3   : > { %2698 = vmatmul.bf16.gmra.mxu2 %v3723_v55 }
 0x6c3   : > { %2703 = vmatmul.bf16.gmra.mxu2 %v3724_v62 }
 0x6d3   : > { %2708 = vmatmul.bf16.gmra.mxu2 %v3725_v58 }
 0x6e3   : > { %2713 = vmatmul.bf16.gmra.mxu2 %v3726_v49 }
 0x6f6   : > { %v2679_v42 = vpop.f32.mrf.mxu2 }
 0x6f7   : > { %v2680_v37 = vadd.f32 %v2679_v42, %v2560_v20  ;;  %v2744_v42 = vld [vmem:[%s5189_s10] sm:$0xff] }
 0x6f9   : > { %v2719_v61 = vmax.f32 %v2680_v37, 0.0  ;;  %v3968_v37 = vmov 6  }
 0x6fa   : > { %3826 = vset.pattern.permute.xlu0 %v3968_v37 }
 0x6fb   : > { %2747 = vperm.xlu0 %3826, %v2744_v42  }
 0x6fe   : > { %v2681_v18 = vpop.f32.mrf.mxu2 }
 0x6ff   : > { %v2682_v24 = vadd.f32 %v2681_v18, %v2564_v5 }
 0x701   : > { %v2720_v31 = vmax.f32 %v2682_v24, 0.0 }
 0x703   : > { %v2735_v17 = vpack.c.bf16 %v2720_v31, %v2719_v61 }
 0x706   : > { %v2684_v35 = vpop.f32.mrf.mxu2 }
 0x707   : > { %v2685_v41 = vadd.f32 %v2684_v35, %v2568_v63 }
 0x709   : > { %v2721_v30 = vmax.f32 %v2685_v41, 0.0 }
 0x70e   : > { %v2686_v32 = vpop.f32.mrf.mxu2 }
 0x70f   : > { %v2687_v51 = vadd.f32 %v2686_v32, %v2572_v23 }
 0x711   : > { %v2722_v4 = vmax.f32 %v2687_v51, 0.0 }
 0x713   : > { %v2736_v44 = vpack.c.bf16 %v2722_v4, %v2721_v30 }
 0x716   : > { %v2689_v57 = vpop.f32.mrf.mxu2 }
 0x717   : > { %v2690_v43 = vadd.f32 %v2689_v57, %v2576_v14 }
 0x719   : > { %v2723_v39 = vmax.f32 %v2690_v43, 0.0 }
 0x71e   : > { %v2691_v3 = vpop.f32.mrf.mxu2 }
 0x71f   : > { %v2692_v8 = vadd.f32 %v2691_v3, %v2580_v52 }
 0x721   : > { %v2724_v12 = vmax.f32 %v2692_v8, 0.0 }
 0x723   : > { %v2737_v33 = vpack.c.bf16 %v2724_v12, %v2723_v39 }
 0x726   : > { %v2694_v29 = vpop.f32.mrf.mxu2 }
 0x727   : > { %v2695_v47 = vadd.f32 %v2694_v29, %v2584_v54 }
 0x729   : > { %v2725_v40 = vmax.f32 %v2695_v47, 0.0 }
 0x72e   : > { %v2696_v27 = vpop.f32.mrf.mxu2 }
 0x72f   : > { %v2697_v60 = vadd.f32 %v2696_v27, %v2588_v36 }
 0x731   : > { %v2726_v28 = vmax.f32 %v2697_v60, 0.0 }
 0x733   : > { %v2738_v38 = vpack.c.bf16 %v2726_v28, %v2725_v40 }
 0x736   : > { %v2699_v48 = vpop.f32.mrf.mxu2 }
 0x73e   : > { %v2701_v59 = vpop.f32.mrf.mxu2 }
 0x746   : > { %v2704_v34 = vpop.f32.mrf.mxu2 }
 0x747   : > { %v2705_v20 = vadd.f32 %v2704_v34, %v2600_v25  ;;  %v2743_v25 = vld [vmem:[%s5188_s9] sm:$0xf] }
 0x74e   : > { %v2706_v2 = vpop.f32.mrf.mxu2 }
 0x74f   : > { %v2707_v54 = vadd.f32 %v2706_v2, %v2604_v1 }
 0x751   : > { %v2730_v18 = vmax.f32 %v2707_v54, 0.0 }
 0x756   : > { %v2709_v45 = vpop.f32.mrf.mxu2 }
 0x757   : > { %v2710_v58 = vadd.f32 %v2709_v45, %v2608_v6  ;;  %v2729_v6 = vmax.f32 %v2705_v20, 0.0 }
 0x759   : > { %v2731_v5 = vmax.f32 %v2710_v58, 0.0  ;;  %v2740_v24 = vpack.c.bf16 %v2730_v18, %v2729_v6 }
 0x75e   : > { %v2711_v46 = vpop.f32.mrf.mxu2 }
 0x75f   : > { %v2712_v55 = vadd.f32 %v2711_v46, %v2612_v22 }
 0x761   : > { %v2732_v63 = vmax.f32 %v2712_v55, 0.0 }
 0x763   : > { %v2741_v22 = vpack.c.bf16 %v2732_v63, %v2731_v5 }
 0x766   : > { %v2714_v19 = vpop.f32.mrf.mxu2 }
 0x767   : > { %v2715_v10 = vadd.f32 %v2714_v19, %v2616_v13  ;;  %v2702_v13 = vadd.f32 %v2701_v59, %v2596_v11 }
 0x769   : > { %v2733_v49 = vmax.f32 %v2715_v10, 0.0  ;;  %v2728_v1 = vmax.f32 %v2702_v13, 0.0 }
 0x76d   : > { %v2748_v11 = vpop.permute.xlu0 %2747 }
 0x76e   : > { %v2716_v21 = vpop.f32.mrf.mxu2 }
 0x76f   : > { %v2717_v62 = vadd.f32 %v2716_v21, %v2620_v15  ;;  %v2700_v15 = vadd.f32 %v2699_v48, %v4977_v26 }
 0x771   : > { %v2734_v52 = vmax.f32 %v2717_v62, 0.0  ;;  %v2727_v61 = vmax.f32 %v2700_v15, 0.0 }
 0x773   : > { %v2742_v36 = vpack.c.bf16 %v2734_v52, %v2733_v49  ;;  %v2739_v31 = vpack.c.bf16 %v2728_v1, %v2727_v61 }
 0x775   : > { %2750 = vmatpush.bf16.msrb.mxu3 %v2742_v36 }
 0x779   : > { %2751 = vmatpush.bf16.msrb.mxu3 %v2741_v22 }
 0x77d   : > { %2752 = vmatpush.bf16.msrb.mxu3 %v2740_v24 }
 0x781   : > { %2753 = vmatpush.bf16.msrb.mxu3 %v2739_v31 }
 0x785   : > { %2754 = vmatpush.bf16.msrb.mxu3 %v2738_v38 }
 0x789   : > { %2755 = vmatpush.bf16.msrb.mxu3 %v2737_v33 }
 0x78d   : > { %2756 = vmatpush.bf16.msrb.mxu3 %v2736_v44 }
 0x791   : > { %2757 = vmatpush.bf16.msrb.mxu3 %v2735_v17 }
 0x794   : > { %2758 = vmatmul.bf16.vlgmr.msrb.gmra.mxu3 %v2743_v25 }
 0x817   : > { %v2759_v14 = vpop.f32.mrf.mxu3 }
 0x818   : > { %v4986_v26 = vadd.f32 %v2759_v14, %v2748_v11 }
 0x81a   : > { %v2763_v35 = vmul.f32 %v4986_v26, %v4986_v26 }
 0x81c   : > { %v2765_v23 = vrot.slane %v2763_v35, 1  ;;  %v2768_v32 = vrot.slane %v2763_v35, 2 }
 0x81e   : > { %v2767_v41 = vadd.f32 %v2765_v23, %v2763_v35 }
 0x81f   : > { %v2761_v51 = vpop.f32.mrf.mxu3 }
 0x820   : > { %v4990_v30 = vadd.f32 %v2768_v32, %v2767_v41 }
 0x822   : > { %v2771_v17 = vmax.f32 %v4990_v30, 0.0001 }
 0x824   : > { %3827 = vrsqrt.f32 %v2771_v17  ;;  %vm2779_vm10 = vcmp.eq.f32.partialorder %v2771_v17, inf  ;;  %v2782_v12 = vand.u32 2147483648, %v2771_v17  ;;  %vm2781_vm1 = vcmp.eq.f32.partialorder %v2771_v17, 0.0 }
 0x82a   : > { %v3828_v4 = vpop.eup %3827 }
 0x82b   : > { %v2773_v44 = vmul.f32 %v3828_v4, %v2771_v17 }
 0x82d   : > { %v2774_v57 = vmul.f32 %v3828_v4, %v2773_v44 }
 0x82f   : > { %v2775_v43 = vmul.f32 0.5, %v2774_v57 }
 0x831   : > { %v2776_v3 = vsub.f32 1.5, %v2775_v43 }
 0x833   : > { %v2777_v8 = vmul.f32 %v3828_v4, %v2776_v3 }
 0x835   : > { %v2778_v39 = vmul.f32 %v2777_v8, %v2771_v17 }
 0x837   : > { %v2780_v33 = vsel %vm2779_vm10, %v2771_v17, %v2778_v39 }
 0x838   : > { %v4993_v29 = vsel %vm2781_vm1, %v2782_v12, %v2780_v33 }
 0x839   : > { %v2788_v47 = vand.u32 2139095040, %v4993_v29  ;;  %v2785_v40 = vand.u32 2147483647, %v4993_v29  ;;  %vm2787_vm0 = vcmp.lt.s32.totalorder %v4993_v29, 0  ;;  %3829 = vrcp.f32 %v4993_v29 }
 0x83b   : > { %v2789_v27 = vshrl.u32 %v2788_v47, 23  ;;  %v2792_v38 = vand.u32 8388607, %v2785_v40  ;;  %vm5067_vm15 = vcmp.le.f32.partialorder %v2785_v40, 0.7853982 }
 0x83d   : > { %v3661_v60 = vadd.s32 4294967169, %v2789_v27  ;;  %v2793_v2 = vor.u32 8388608, %v2792_v38 }
 0x83f   : > { %v2795_v28 = vadd.s32 1, %v3661_v60 }
 0x841   : > { %vm2796_vm2 = vcmp.gt.s32.totalorder %v2795_v28, 0 }
 0x842   : > { %v2797_v48 = vsel %vm2796_vm2, %v2795_v28, 0 }
 0x843   : > { %v2799_v59 = vand.u32 31, %v2797_v48  ;;  %v4999_v45 = vshrl.u32 %v2797_v48, 5 }
 0x845   : > { %v2800_v34 = vsub.s32 32, %v2799_v59  ;;  %v2802_v46 = vshll.u32 %v3960_v7, %v2799_v59  ;;  %v2805_v19 = vshll.u32 %v3961_v9, %v2799_v59  ;;  %v2808_v55 = vshll.u32 %v3962_v16, %v2799_v59 }
 0x846   : > { %v2811_v58 = vshll.u32 %v3959_v56, %v2799_v59  ;;  %v2814_v52 = vshll.u32 %v3957_v50, %v2799_v59  ;;  %vm2817_vm3 = vcmp.lt.s32.totalorder %v4999_v45, 1  ;;  %vm2820_vm4 = vcmp.lt.s32.totalorder %v4999_v45, 4 }
 0x847   : > { %v2803_v10 = vshrl.u32 %v3961_v9, %v2800_v34  ;;  %v2806_v21 = vshrl.u32 %v3962_v16, %v2800_v34  ;;  %v2809_v62 = vshrl.u32 %v3959_v56, %v2800_v34  ;;  %v2812_v49 = vshrl.u32 %v3957_v50, %v2800_v34 }
 0x848   : > { %v2815_v54 = vshrl.u32 %v3958_v53, %v2800_v34  ;;  %v5012_v9 = vshll.u32 %v2793_v2, 8  ;;  %vm2819_vm5 = vcmp.lt.s32.totalorder %v4999_v45, 3  ;;  %vm2818_vm6 = vcmp.lt.s32.totalorder %v4999_v45, 2 }
 0x849   : > { %v2804_v63 = vor.u32 %v2803_v10, %v2802_v46  ;;  %v2807_v36 = vor.u32 %v2806_v21, %v2805_v19  ;;  %v2810_v42 = vor.u32 %v2809_v62, %v2808_v55  ;;  %v2813_v20 = vor.u32 %v2812_v49, %v2811_v58 }
 0x84a   : > { %v2816_v5 = vor.u32 %v2815_v54, %v2814_v52  ;;  %v2834_v15 = vand.u32 65535, %v5012_v9  ;;  %v2835_v6 = vshrl.u32 %v5012_v9, 16  ;;  %v2801_v60 = vshrl.u32 %v3960_v7, %v2800_v34 }
 0x84b   : > { %v2825_v56 = vsel %vm2817_vm3, %v2804_v63, %v2807_v36  ;;  %v2829_v16 = vsel %vm2817_vm3, %v2807_v36, %v2810_v42  ;;  %v2826_v50 = vsel %vm2820_vm4, %v2813_v20, 920167782  ;;  %v2822_v33 = vsel %vm2820_vm4, %v2810_v42, 2102212464 }
 0x84c   : > { %v2830_v53 = vsel %vm2820_vm4, %v2816_v5, 1326507024  ;;  %v2827_v37 = vsel %vm2819_vm5, %v2810_v42, %v2826_v50  ;;  %v2821_v46 = vsel %vm2817_vm3, %v2801_v60, %v2804_v63  ;;  %v2823_v19 = vsel %vm2819_vm5, %v2807_v36, %v2822_v33 }
 0x84d   : > { %v2831_v13 = vsel %vm2819_vm5, %v2813_v20, %v2830_v53  ;;  %v2828_v18 = vsel %vm2818_vm6, %v2825_v56, %v2827_v37  ;;  %v2824_v7 = vsel %vm2818_vm6, %v2821_v46, %v2823_v19  ;;  %v3186_v60 = vrot.slane %v4986_v26, 4 }
 0x84e   : > { %v2832_v22 = vsel %vm2818_vm6, %v2829_v16, %v2831_v13  ;;  %v2858_v61 = vand.u32 65535, %v2828_v18  ;;  %v2859_v31 = vshrl.u32 %v2828_v18, 16  ;;  %v2878_v52 = vmul.u32 %v5012_v9, %v2824_v7 }
 0x84f   : > { %v2836_v1 = vand.u32 65535, %v2832_v22  ;;  %v2837_v24 = vshrl.u32 %v2832_v22, 16  ;;  %v3196_v46 = vrot.slane %v4986_v26, 1  ;;  %v3188_v7 = vmul.f32 %v3186_v60, %v4986_v26 }
 0x850   : > { %v2861_v14 = vmul.u32 %v2859_v31, %v2834_v15  ;;  %v2862_v35 = vmul.u32 %v2858_v61, %v2835_v6  ;;  %v2860_v51 = vmul.u32 %v2858_v61, %v2834_v15  ;;  %v2863_v57 = vmul.u32 %v2859_v31, %v2835_v6 }
 0x851   : > { %v2839_v25 = vmul.u32 %v2837_v24, %v2834_v15  ;;  %v2840_v11 = vmul.u32 %v2836_v1, %v2835_v6  ;;  %v2838_v23 = vmul.u32 %v2836_v1, %v2834_v15  ;;  %v2841_v32 = vmul.u32 %v2837_v24, %v2835_v6  ;;  %v5050_v24 = vld [vmem:[%s4113_s1] sm:$0x7]  ;;  %s392_s1 = sand.u32 1, %s3943_s18  }
 0x852   : > { %v2864_v17 = vshll.u32 %v2861_v14, 16  ;;  %v2866_v3 = vshll.u32 %v2862_v35, 16  ;;  %v2865_v59 = vshrl.u32 %v2861_v14, 16  ;;  %v2867_v55 = vshrl.u32 %v2862_v35, 16  ;;  %s3401_s30 = sshll.u32 %s392_s1, 2  ;;  %s3309_s24 = scalar_lea.sflag [#allocation4], %s392_s1 }
 0x853   : > { %v2842_v41 = vshll.u32 %v2839_v25, 16  ;;  %v2844_v4 = vshll.u32 %v2840_v11, 16  ;;  %v2843_v28 = vshrl.u32 %v2839_v25, 16  ;;  %v2845_v10 = vshrl.u32 %v2840_v11, 16  ;;  %s394_s21 = scalar_lea.vmem [#allocation5], %s3401_s30 }
 0x854   : > { %vm2868_vm8 = vc.u32 %v2860_v51, %v2864_v17  ;;  %v2870_v8 = vadd.s32 %v2864_v17, %v2860_v51  ;;  %v3115_v61 = vrot.slane %v5050_v24, 2  ;;  %v3122_v31 = vmul.f32 %v5050_v24, %v4986_v26  ;;  %s3321_s16 = sshll.u32 %s394_s21, 4  ;;  %s3322_s16 = int_to_ptr.vmem [resolvable:$true] %s3321_s16 }
 0x855   : > { %vm2846_vm7 = vc.u32 %v2838_v23, %v2842_v41  ;;  %v2848_v44 = vadd.s32 %v2842_v41, %v2838_v23  ;;  %v2869_v12 = vsel %vm2868_vm8, 1, %v3956_v0  ;;  %v3105_v11 = vrot.slane %v5050_v24, 7 }
 0x856   : > { %v2847_v43 = vsel %vm2846_vm7, 1, %v3956_v0  ;;  %v2871_v27 = vadd.s32 %v2869_v12, %v2863_v57  ;;  %vm2872_vm11 = vc.u32 %v2870_v8, %v2866_v3  ;;  %v2874_v49 = vadd.s32 %v2870_v8, %v2866_v3 }
 0x857   : > { %v2849_v39 = vadd.s32 %v2847_v43, %v2841_v32  ;;  %vm2850_vm9 = vc.u32 %v2848_v44, %v2844_v4  ;;  %v2873_v48 = vsel %vm2872_vm11, 1, %v3956_v0  ;;  %v3206_v14 = vrot.slane %v4986_v26, 3 }
 0x858   : > { %v2851_v47 = vsel %vm2850_vm9, 1, %v3956_v0  ;;  %v2875_v2 = vadd.s32 %v2873_v48, %v2871_v27  ;;  %v3112_v41 = vrot.slane %v5050_v24, 6  ;;  %v3117_v32 = vmul.f32 %v3115_v61, %v4986_v26 }
 0x859   : > { %v2853_v38 = vadd.s32 %v2851_v47, %v2849_v39  ;;  %v3124_v51 = vrot.slane %v3122_v31, 1  ;;  %v3107_v4 = vmul.f32 %v3105_v11, %v4986_v26  ;;  %v3208_v44 = vmul.f32 %v3206_v14, %v4986_v26 }
 0x85a   : > { %v2876_v62 = vadd.s32 %v2875_v2, %v2865_v59  ;;  %v3102_v43 = vrot.slane %v5050_v24, 1  ;;  %v3114_v3 = vmul.f32 %v3112_v41, %v4986_v26  ;;  %v3119_v8 = vrot.slane %v3117_v32, 6 }
 0x85b   : > { %v2854_v21 = vadd.s32 %v2853_v38, %v2843_v28  ;;  %v3126_v39 = vadd.f32 %v3124_v51, %v3122_v31  ;;  %v3189_v12 = vrot.slane %v4986_v26, 2  ;;  %v3109_v27 = vrot.slane %v3107_v4, 1 }
 0x85c   : > { %v2877_v34 = vadd.s32 %v2876_v62, %v2867_v55  ;;  %v3127_v48 = vrot.slane %v3122_v31, 2  ;;  %v3210_v59 = vrot.slane %v3208_v44, 1  ;;  %v3104_v40 = vmul.f32 %v3102_v43, %v4986_v26  ;;  %v3830_v43 = vpop.eup %3829 }
 0x85d   : > { %v2855_v58 = vadd.s32 %v2854_v21, %v2845_v10  ;;  %v5079_v19 = vsub.f32 %v3114_v3, %v3119_v8  ;;  %v3191_v21 = vmul.f32 %v3189_v12, %v4986_v26  ;;  %v3173_v31 = vrot.slane %v4990_v30, 6 }
 0x85e   : > { %v2881_v0 = vadd.s32 1, %v2877_v34  ;;  %v3129_v10 = vadd.f32 %v3127_v48, %v3126_v39  ;;  %vm2928_vm6 = vweird.f32 %v4993_v29 }
 0x85f   : > { %vm2880_vm12 = vc.u32 %v2855_v58, %v2874_v49  ;;  %v2879_v37 = vadd.s32 %v2874_v49, %v2855_v58  ;;  %v5084_v49 = vsub.f32 %v3104_v40, %v3109_v27  ;;  %v3175_v39 = vmul.f32 %v5050_v24, %v3173_v31 }
 0x860   : > { %v2882_v54 = vsel %vm2880_vm12, %v2881_v0, %v2877_v34  ;;  %v3212_v34 = vadd.f32 %v3210_v59, %v3208_v44  ;;  %v3170_v61 = vrot.slane %v3129_v10, 6 }
 0x861   : > { %v2883_v42 = vadd.s32 %v2882_v54, %v2878_v52  ;;  %v5088_v54 = vmul.f32 %v3196_v46, %v4986_v26  ;;  %v3095_v46 = vmul.f32 %v3830_v43, %v3830_v43 }
 0x862   : > { %v3172_v8 = vmul.f32 %v3170_v61, %v4986_v26 }
 0x863   : > { %v2884_v63 = vadd.s32 536870912, %v2883_v42 }
 0x865   : > { %v2885_v20 = vshrl.u32 %v2884_v63, 30  ;;  %v3141_v63 = vrot.slane %v5079_v19, 2 }
 0x867   : > { %v2886_v5 = vshll.u32 %v2885_v20, 30  ;;  %v2909_v28 = vsub.s32 4, %v2885_v20 }
 0x869   : > { %v2887_v36 = vsub.s32 %v2883_v42, %v2886_v5  ;;  %v2910_v58 = vsel %vm2787_vm0, %v2909_v28, %v2885_v20  ;;  %v3199_v42 = vrot.slane %v4986_v26, 5  ;;  %v3149_v5 = vrot.slane %v3129_v10, 7 }
 0x86a   : > { %v2912_v20 = vsel %vm5067_vm15, 0, %v2910_v58 }
 0x86b   : > { %vm2888_vm13 = vcmp.lt.s32.totalorder %v2887_v36, 0  ;;  %v2889_v56 = vsub.s32 0, %v2887_v36 }
 0x86d   : > { %v2890_v16 = vsel %vm2888_vm13, %v2889_v56, %v2887_v36  ;;  %v3213_v56 = vrot.slane %v3208_v44, 2  ;;  %v3084_v44 = vand.u32 3, %v2912_v20 }
 0x86e   : > { %v2891_v50 = vclz %v2890_v16 }
 0x86f   : > { %vm3085_vm10 = vcmp.lt.s32.totalorder %v3084_v44, 2  ;;  %vm3086_vm1 = vcmp.eq.s32.totalorder %v3084_v44, 0  ;;  %vm3089_vm5 = vcmp.eq.s32.totalorder %v3084_v44, 2 }
 0x870   : > { %v3662_v53 = vadd.s32 4294967294, %v2891_v50 }
 0x872   : > { %vm3663_vm14 = vcmp.lt.s32.totalorder %v3662_v53, 0 }
 0x873   : > { %v2894_v45 = vsel %vm3663_vm14, 0, %v3662_v53  ;;  %v3153_v53 = vrot.slane %v4990_v30, 7 }
 0x874   : > { %v2895_v13 = vsub.s32 32, %v2894_v45  ;;  %v2899_v18 = vsub.s32 4294967266, %v2894_v45  ;;  %v2896_v22 = vshll.u32 %v2887_v36, %v2894_v45  ;;  %v3193_v36 = vrot.slane %v3191_v21, 1 }
 0x875   : > { %v3215_v45 = vadd.f32 %v3213_v56, %v3212_v34  ;;  %v3155_v14 = vmul.f32 %v5050_v24, %v3153_v53 }
 0x876   : > { %v2897_v15 = vshrl.u32 %v2879_v37, %v2895_v13  ;;  %v2900_v9 = vadd.s32 127, %v2899_v18  ;;  %v3249_v37 = vrot.slane %v4990_v30, 4  ;;  %v3272_v13 = vrot.slane %v4990_v30, 3 }
 0x877   : > { %v3246_v41 = vrot.slane %v3215_v45, 7  ;;  %v3269_v48 = vrot.slane %v3215_v45, 6 }
 0x878   : > { %v2898_v6 = vor.u32 %v2897_v15, %v2896_v22  ;;  %v2901_v1 = vshll.u32 %v2900_v9, 23  ;;  %v5100_v15 = vmul.f32 %v5050_v24, %v4990_v30  ;;  %v3201_v9 = vmul.f32 %v3199_v42, %v4986_v26 }
 0x879   : > { %v3251_v32 = vmul.f32 %v3249_v37, %v4986_v26  ;;  %v3274_v51 = vmul.f32 %v3272_v13, %v4986_v26  ;;  %v3248_v60 = vmul.f32 %v3246_v41, %v4986_v26  ;;  %v3271_v58 = vmul.f32 %v3269_v48, %v4986_v26 }
 0x87a   : > { %v2902_v25 = vor.u32 4788187, %v2901_v1  ;;  %v2905_v23 = vcvt.s32.f32 %v2898_v6  ;;  %v2929_v6 = vadd.s32 3, %v2912_v20  ;;  %v5104_v1 = vmul.f32 %v3149_v5, %v4986_v26 }
 0x87b   : > { %v3253_v28 = vrot.slane %v3251_v32, 3  ;;  %v3276_v59 = vrot.slane %v3274_v51, 3  ;;  %v3131_v20 = vrot.slane %v5084_v49, 1 }
 0x87c   : > { %v2903_v35 = vand.u32 2147483647, %v2902_v25  ;;  %v2930_v3 = vand.u32 3, %v2929_v6 }
 0x87d   : > { %v3255_v53 = vsub.f32 %v3248_v60, %v3253_v28 }
 0x87e   : > { %v2906_v17 = vmul.f32 %v2905_v23, %v2903_v35  ;;  %v3225_v35 = vrot.slane %v4990_v30, 5  ;;  %v5110_v23 = vmul.f32 %v3129_v10, %v4986_v26  ;;  %v3203_v30 = vrot.slane %v3201_v9, 6 }
 0x87f   : > { %vm2931_vm2 = vcmp.lt.s32.totalorder %v2930_v3, 2  ;;  %vm2932_vm3 = vcmp.eq.s32.totalorder %v2930_v3, 0  ;;  %vm2935_vm4 = vcmp.eq.s32.totalorder %v2930_v3, 2 }
 0x880   : > { %v2907_v57 = vxor.u32 2147483648, %v2906_v17  ;;  %v3227_v27 = vmul.f32 %v3225_v35, %v4986_v26 }
 0x882   : > { %v2908_v47 = vsel %vm2787_vm0, %v2907_v57, %v2906_v17  ;;  %v5114_v57 = vsub.f32 %v3188_v7, %v3193_v36  ;;  %v3098_v36 = vmul.f32 %v3830_v43, %v3095_v46 }
 0x883   : > { %v2911_v38 = vsel %vm5067_vm15, %v4993_v29, %v2908_v47  ;;  %v3156_v47 = vsub.f32 %v5104_v1, %v3155_v14 }
 0x884   : > { %v2913_v2 = vmul.f32 %v2911_v38, %v2911_v38  ;;  %v3217_v6 = vrot.slane %v5114_v57, 1 }
 0x885   : > { %v3158_v61 = vrot.slane %v3156_v47, 1 }
 0x886   : > { %v2914_v55 = vmul.f32 -0.001358992, %v2913_v2  ;;  %v2921_v62 = vmul.f32 -0.00019511016, %v2913_v2 }
 0x888   : > { %v2915_v0 = vadd.f32 0.041655596, %v2914_v55  ;;  %v2922_v52 = vadd.f32 0.008332121, %v2921_v62 }
 0x88a   : > { %v2916_v16 = vmul.f32 %v2915_v0, %v2913_v2  ;;  %v2923_v50 = vmul.f32 %v2922_v52, %v2913_v2  ;;  %v3205_v0 = vsub.f32 %v5088_v54, %v3203_v30  ;;  %v3229_v52 = vrot.slane %v3227_v27, 3 }
 0x88c   : > { %v2917_v18 = vadd.f32 -0.4999988, %v2916_v16  ;;  %v2924_v22 = vadd.f32 -0.16666654, %v2923_v50  ;;  %v3176_v16 = vsub.f32 %v3172_v8, %v3175_v39  ;;  %v3224_v50 = vmul.f32 %v3215_v45, %v4986_v26 }
 0x88d   : > { %v3238_v31 = vrot.slane %v3205_v0, 2 }
 0x88e   : > { %v2918_v25 = vmul.f32 %v2917_v18, %v2913_v2  ;;  %v2925_v11 = vmul.f32 %v2924_v22, %v2913_v2  ;;  %v3278_v22 = vsub.f32 %v3271_v58, %v3276_v59  ;;  %v3231_v1 = vsub.f32 %v3224_v50, %v3229_v52 }
 0x890   : > { %v2919_v17 = vadd.f32 1.0, %v2918_v25  ;;  %v2926_v4 = vadd.f32 1.0, %v2925_v11  ;;  %v3178_v25 = vrot.slane %v3176_v16, 2  ;;  %v3280_v41 = vrot.slane %v3278_v22, 2 }
 0x892   : > { %v2927_v12 = vmul.f32 %v2926_v4, %v2911_v38  ;;  %v2936_v33 = vxor.u32 2147483648, %v2919_v17 }
 0x894   : > { %v2933_v2 = vxor.u32 2147483648, %v2927_v12  ;;  %v2937_v38 = vsel %vm2935_vm4, %v2936_v33, %v2927_v12  ;;  %v3091_v21 = vsel %vm3089_vm5, %v2936_v33, %v2927_v12 }
 0x896   : > { %v2934_v40 = vsel %vm2932_vm3, %v2919_v17, %v2933_v2  ;;  %v3088_v10 = vsel %vm3086_vm1, %v2919_v17, %v2933_v2 }
 0x897   : > { %v2938_v55 = vsel %vm2931_vm2, %v2934_v40, %v2937_v38  ;;  %v3092_v62 = vsel %vm3085_vm10, %v3088_v10, %v3091_v21 }
 0x898   : > { %v2939_v7 = vsel %vm2928_vm6, nan, %v2938_v55  ;;  %v3093_v34 = vsel %vm2928_vm6, nan, %v3092_v62 }
 0x899   : > { %v3094_v42 = vmul.f32 %v3830_v43, %v2939_v7  ;;  %v3096_v5 = vsub.f32 1.0, %v3093_v34  ;;  %v3099_v56 = vsub.f32 %v4993_v29, %v2939_v7  ;;  %v3137_v29 = vsub.f32 %v5110_v23, %v5100_v15 }
 0x89b   : > { %v3097_v37 = vmul.f32 %v3096_v5, %v3095_v46  ;;  %v3100_v13 = vmul.f32 %v3099_v56, %v3098_v36  ;;  %v3143_v18 = vmul.f32 %v3141_v63, %v3094_v42  ;;  %v3133_v9 = vmul.f32 %v3131_v20, %v3094_v42 }
 0x89c   : > { %v3165_v54 = vmul.f32 %v5084_v49, %v3094_v42  ;;  %v3257_v63 = vrot.slane %v3255_v53, 1 }
 0x89d   : > { %v3145_v45 = vrot.slane %v3143_v18, 7  ;;  %v3219_v11 = vmul.f32 %v3217_v6, %v3097_v37  ;;  %v3232_v14 = vmul.f32 %v3231_v1, %v3100_v13  ;;  %v3160_v35 = vmul.f32 %v3158_v61, %v3097_v37 }
 0x89e   : > { %v3240_v19 = vmul.f32 %v3238_v31, %v3097_v37  ;;  %v3134_v32 = vadd.f32 %v5050_v24, %v3133_v9  ;;  %v3138_v49 = vmul.f32 %v3137_v29, %v3097_v37  ;;  %v3167_v51 = vrot.slane %v3165_v54, 6 }
 0x89f   : > { %v3221_v17 = vrot.slane %v3219_v11, 5  ;;  %v3180_v4 = vmul.f32 %v3178_v25, %v3097_v37  ;;  %v3259_v23 = vmul.f32 %v3257_v63, %v3100_v13  ;;  %v3264_v44 = vmul.f32 %v5114_v57, %v3097_v37 }
 0x8a0   : > { %v3242_v15 = vrot.slane %v3240_v19, 4  ;;  %v3147_v43 = vadd.f32 %v5050_v24, %v3145_v45  ;;  %v3234_v8 = vrot.slane %v3232_v14, 5  ;;  %v3282_v39 = vmul.f32 %v3280_v41, %v3100_v13 }
 0x8a1   : > { %v3223_v3 = vadd.f32 %v3221_v17, %v4986_v26  ;;  %v3162_v30 = vrot.slane %v3160_v35, 7  ;;  %v3261_v33 = vrot.slane %v3259_v23, 4  ;;  %v3266_v47 = vrot.slane %v3264_v44, 3 }
 0x8a2   : > { %v3244_v12 = vadd.f32 %v3242_v15, %v4986_v26  ;;  %v3169_v27 = vadd.f32 %v5050_v24, %v3167_v51  ;;  %v3182_v28 = vrot.slane %v3180_v4, 6  ;;  %v3284_v59 = vrot.slane %v3282_v39, 3 }
 0x8a3   : > { %v3236_v60 = vadd.f32 %v3234_v8, %v3223_v3  ;;  %v3268_v57 = vadd.f32 %v3266_v47, %v4986_v26  ;;  %v3139_v2 = vadd.f32 %v3138_v49, %v3134_v32  ;;  %v3164_v40 = vadd.f32 %v3162_v30, %v3147_v43 }
 0x8a4   : > { %v3263_v48 = vadd.f32 %v3261_v33, %v3244_v12  ;;  %v3184_v55 = vadd.f32 %v3182_v28, %v3169_v27 }
 0x8a5   : > { %v3288_v46 = vrot.slane %v3236_v60, 3  ;;  %v3286_v38 = vadd.f32 %v3284_v59, %v3268_v57 }
 0x8a6   : > { %v3292_v10 = vrot.slane %v3263_v48, 3 }
 0x8a7   : > { %v3290_v21 = vadd.f32 %v3288_v46, %v3139_v2  ;;  %v3296_v58 = vrot.slane %v3286_v38, 3 }
 0x8a8   : > { %v3294_v62 = vadd.f32 %v3292_v10, %v3164_v40 }
 0x8a9   : > { %vm3299_vm7 = vcmp.ne.f32.partialorder %v3290_v21, %v3290_v21  ;;  %v3298_v26 = vadd.f32 %v3296_v58, %v3184_v55 }
 0x8aa   : > { %v3300_v7 = vsel %vm3299_vm7, %v5050_v24, %v3290_v21  ;;  %vm3302_vm8 = vcmp.ne.f32.partialorder %v3294_v62, %v3294_v62 }
 0x8ab   : > { %3301 = vst [vmem:[%s394_s21] sm:$0x1] %v3300_v7  ;;  %v3303_v34 = vsel %vm3302_vm8, %v5050_v24, %v3294_v62  ;;  %vm3305_vm9 = vcmp.ne.f32.partialorder %v3298_v26, %v3298_v26 }
 0x8ac   : > { %3304 = vst [vmem:[%s394_s21] sm:$0x2] %v3303_v34  ;;  %v3306_v0 = vsel %vm3305_vm9, %v5050_v24, %v3298_v26 }
 0x8ad   : > { %3307 = vst [vmem:[%s394_s21] sm:$0x4] %v3306_v0 }
 0x8ae   : > { %3912 = shalt.err (!%p3909_p8)
}
 0x8af   : > { %3747 = dma.vmem_to_hbm [thread:$0]  (%p4067_p5), %s3322_s16, 64, %s3324_s22, %s3309_s24  }
 0x8b0 PF: > { %p3759_p9 = scmp.ge.s32.totalorder %s3951_s20, 2  ;;  %s3335_s1 = sand.u32 1, %s3939_s17  }
 0x8b1   : > { %s3336_s21 = scalar_lea.sflag [#allocation4], %s3335_s1 }
 0x8b2   : > { %p3754_p10 = pnand %p3759_p9, %p4071_p6 }
 0x8b4   : > { %p3755_p11 = pneg %p3754_p10 }
 0x8b6   : > { %3934 = dma.done.wait (%p3755_p11), %s3336_s21, 64  }
 0x8b7   : > { %3936 = vsyncadd (%p3755_p11), %s3336_s21, 4294967232  ;;  %p22_p12 = scmp.ge.s32.totalorder %s4054_s23, 4   ;;  %s5201_s17 = smov %s3943_s18 }
 0x8b8   : > { %s5202_s18 = smov %s3947_s19  ;;  %s5203_s19 = smov %s4065_s26 }
 0x8b9   : > { %s5204_s20 = smov %s4054_s23  ;;  %24 = sbr.rel (!%p22_p12) target bundleno = 6 (0x6), region = 104 }
 0x8be   :  { %3342 = vsyncpa [#allocation3], 1 }
 0x8bf   :  { %3344 = vsyncpa [#allocation3 + $0x1], 1 }
 0x8c0   :  { %3345 = vsyncpa [#allocation4], 1 }
 0x8c1   :  { %3347 = vsyncpa [#allocation4 + $0x1], 1 }

</bundles_post_ra>
